<compile_context>
chip_gen: v7x
topology: tpu7x:2x2x1
jax: 0.10.0
libtpu: 0.0.40
codegen_flags: <defaults>
</compile_context>

<pallas_src>
import jax
import jax.numpy as jnp
from jax import lax
from jax.experimental import pallas as pl
from jax.experimental.pallas import tpu as pltpu

NEG_SLOPE = 0.2


def _round_up(x, m):
    return ((x + m - 1) // m) * m


# ------------------------ one-time parameter repacking ----------------------- #

def _conv4x4s2p1_to_dense_chw(w, hin, win, cin):
    """Lower Conv2d(k=4, s=2, p=1) with weight w (Cout,Cin,4,4) to a dense matrix
    T of shape (Cin*Hin*Win, Cout*Ho*Wo) such that  y_flat = x_flat @ T  with both
    flats in NCHW order.  Built by applying the conv to the identity basis (one-
    time weight repacking done with XLA; the forward itself is the Pallas kernel).
    """
    k = cin * hin * win
    basis = jnp.eye(k, dtype=jnp.float32).reshape(k, cin, hin, win)
    y = lax.conv_general_dilated(
        basis, w.astype(jnp.float32), window_strides=(2, 2),
        padding=((1, 1), (1, 1)),
        dimension_numbers=("NCHW", "OIHW", "NCHW"),
        precision=lax.Precision.HIGHEST)
    return y.reshape(k, -1)                 # columns in (cout, ho, wo) NCHW order


def prepare_params(params, image_size, image_channel, std_channel):
    channels = [std_channel, 2 * std_channel, 4 * std_channel]
    in_ch = [image_channel, channels[0], channels[1]]
    in_sz = [image_size, image_size // 2, image_size // 4]

    packed = {}
    for l in range(3):
        w, b = params[f"w{l + 1}"], params[f"b{l + 1}"]
        t = _conv4x4s2p1_to_dense_chw(w, in_sz[l], in_sz[l], in_ch[l])
        out_sz = in_sz[l] // 2
        packed[f"t{l + 1}"] = t.astype(jnp.bfloat16)
        # bias flattened in the same (cout, ho, wo) column order
        packed[f"tb{l + 1}"] = jnp.repeat(b, out_sz * out_sz).reshape(1, -1).astype(jnp.float32)

    num_class = params["emb"].shape[0]
    ncp = _round_up(num_class, 128)          # lane/K-aligned one-hot contraction
    packed["emb"] = jnp.pad(params["emb"],
                            ((0, ncp - num_class), (0, 0))).astype(jnp.bfloat16)
    packed["em_w"] = params["em_w"].astype(jnp.bfloat16)
    packed["em_b"] = params["em_b"].reshape(1, -1).astype(jnp.float32)
    packed["adv1_w"] = params["adv1_w"].astype(jnp.bfloat16)
    packed["adv1_b"] = params["adv1_b"].reshape(1, -1).astype(jnp.float32)
    packed["adv2_w"] = params["adv2_w"].reshape(1, -1).astype(jnp.float32)   # (1, 512)
    packed["adv2_b"] = params["adv2_b"].reshape(1, 1).astype(jnp.float32)
    return packed


# --------------------------------- kernel ------------------------------------ #

def _disc_fused_kernel(x_ref, oh_ref,
                       t1_ref, tb1_ref, t2_ref, tb2_ref, t3_ref, tb3_ref,
                       emb_ref, em_w_ref, em_b_ref,
                       adv1_w_ref, adv1_b_ref, adv2_w_ref, adv2_b_ref,
                       o_ref):
    """Entire Discriminator.forward: bf16 MXU matmuls, f32 accum + epilogues."""

    def leaky(v):
        return jnp.where(v >= 0.0, v, NEG_SLOPE * v)

    # encoder.layer1..3 : Conv2d(4, s=2, p=1) + LeakyReLU, lowered to dense GEMMs
    h = jnp.dot(x_ref[...], t1_ref[...], preferred_element_type=jnp.float32)
    h = leaky(h + tb1_ref[...]).astype(jnp.bfloat16)
    h = jnp.dot(h, t2_ref[...], preferred_element_type=jnp.float32)
    h = leaky(h + tb2_ref[...]).astype(jnp.bfloat16)
    h = jnp.dot(h, t3_ref[...], preferred_element_type=jnp.float32)
    feat = leaky(h + tb3_ref[...])                    # (B, feat_dim) f32, NCHW-flat

    # em : Embedding (one-hot matmul) -> Linear(512, feat_dim) -> LeakyReLU(0.2)
    le0 = jnp.dot(oh_ref[...], emb_ref[...], preferred_element_type=jnp.float32)
    le = jnp.dot(le0.astype(jnp.bfloat16), em_w_ref[...],
                 preferred_element_type=jnp.float32) + em_b_ref[...]
    le = leaky(le)                                    # (B, feat_dim) f32

    # torch.multiply + adv[0] : Linear(feat_dim, 512)
    xy = (feat * le).astype(jnp.bfloat16)
    h2 = jnp.dot(xy, adv1_w_ref[...],
                 preferred_element_type=jnp.float32) + adv1_b_ref[...]

    # adv[1] : Linear(512, 1) as VPU multiply + lane reduction (no padded MXU op)
    out = jnp.sum(h2 * adv2_w_ref[...], axis=-1, keepdims=True) + adv2_b_ref[...]
    o_ref[...] = out.astype(o_ref.dtype)


def _fused_forward(packed, x_flat, onehot):
    b = x_flat.shape[0]
    args = (x_flat, onehot,
            packed["t1"], packed["tb1"], packed["t2"], packed["tb2"],
            packed["t3"], packed["tb3"],
            packed["emb"], packed["em_w"], packed["em_b"],
            packed["adv1_w"], packed["adv1_b"], packed["adv2_w"], packed["adv2_b"])

    mats = ("t1", "t2", "t3", "emb", "em_w", "adv1_w", "adv2_w")
    flops = 2 * b * sum(int(packed[m].shape[0]) * int(packed[m].shape[1]) for m in mats)
    bytes_accessed = sum(int(a.size) * a.dtype.itemsize for a in args) + b * 4

    return pl.pallas_call(
        _disc_fused_kernel,
        out_shape=jax.ShapeDtypeStruct((b, 1), jnp.float32),
        in_specs=[pl.BlockSpec(memory_space=pltpu.MemorySpace.VMEM)] * len(args),
        out_specs=pl.BlockSpec(memory_space=pltpu.MemorySpace.VMEM),
        cost_estimate=pl.CostEstimate(flops=flops, transcendentals=0,
                                      bytes_accessed=bytes_accessed),
    )(*args)


# -------------------------------- forward ------------------------------------ #

@jax.jit
def discriminator_forward(packed, x, label):
    """x: (B, C, H, W) f32 NCHW; label: (B,) int32.  Returns (B, 1) f32."""
    b = x.shape[0]
    x_flat = x.reshape(b, -1).astype(jnp.bfloat16)        # NCHW flatten == t1 rows
    onehot = jax.nn.one_hot(label, packed["emb"].shape[0], dtype=jnp.bfloat16)
    return _fused_forward(packed, x_flat, onehot)


# ----------------------------- parameter init --------------------------------- #

def init_discriminator_params(key, image_size, image_channel, std_channel,
                              latent_dim, num_class):
    del latent_dim  # encoder latent head is unused in Discriminator.forward
    channels = [std_channel, 2 * std_channel, 4 * std_channel]
    enc_image_size = image_size // 8
    feat_dim = enc_image_size * enc_image_size * channels[-1]

    ks = jax.random.split(key, 13)
    s = 0.05
    # NOTE: Linear weights stored as (in, out); a PyTorch (out, in) checkpoint
    # would need a transpose on import.
    return {
        # encoder convs (PyTorch layout: (Cout, Cin, kH, kW))
        "w1": s * jax.random.normal(ks[0], (channels[0], image_channel, 4, 4), jnp.float32),
        "b1": s * jax.random.normal(ks[1], (channels[0],), jnp.float32),
        "w2": s * jax.random.normal(ks[2], (channels[1], channels[0], 4, 4), jnp.float32),
        "b2": s * jax.random.normal(ks[3], (channels[1],), jnp.float32),
        "w3": s * jax.random.normal(ks[4], (channels[2], channels[1], 4, 4), jnp.float32),
        "b3": s * jax.random.normal(ks[5], (channels[2],), jnp.float32),
        # em: Embedding(num_class, 512) -> Linear(512, feat_dim) -> LeakyReLU
        "emb": s * jax.random.normal(ks[6], (num_class, 512), jnp.float32),
        "em_w": s * jax.random.normal(ks[7], (512, feat_dim), jnp.float32),
        "em_b": s * jax.random.normal(ks[8], (feat_dim,), jnp.float32),
        # adv: Linear(feat_dim, 512) -> Linear(512, 1)
        "adv1_w": s * jax.random.normal(ks[9], (feat_dim, 512), jnp.float32),
        "adv1_b": s * jax.random.normal(ks[10], (512,), jnp.float32),
        "adv2_w": s * jax.random.normal(ks[11], (512, 1), jnp.float32),
        "adv2_b": s * jax.random.normal(ks[12], (1,), jnp.float32),
    }


# ----------------------------- pure-JAX reference ----------------------------- #

def discriminator_forward_ref(params, x, label):
    """f32 reference mirroring the PyTorch module (tolerance check for bf16 drift)."""
    hp = lax.Precision.HIGHEST

    def conv_lrelu(h, w, b):
        y = lax.conv_general_dilated(h, w, (2, 2), ((1, 1), (1, 1)),
                                     dimension_numbers=("NCHW", "OIHW", "NCHW"),
                                     precision=hp)
        y = y + b[None, :, None, None]
        return jnp.where(y >= 0.0, y, NEG_SLOPE * y)

    h = conv_lrelu(x, params["w1"], params["b1"])
    h = conv_lrelu(h, params["w2"], params["b2"])
    h = conv_lrelu(h, params["w3"], params["b3"])
    feat = h.reshape(x.shape[0], -1)

    le = jnp.take(params["emb"], label, axis=0)
    le = jnp.dot(le, params["em_w"], precision=hp) + params["em_b"]
    le = jnp.where(le >= 0.0, le, NEG_SLOPE * le)
    xy = feat * le
    h2 = jnp.dot(xy, params["adv1_w"], precision=hp) + params["adv1_b"]
    return jnp.dot(h2, params["adv2_w"], precision=hp) + params["adv2_b"]


# ----------------------------------- main -------------------------------------- #

if __name__ == "__main__":
    image_size, image_channel, std_channel = 16, 4, 8
    latent_dim, num_class, batch = 32, 10, 2

    key = jax.random.PRNGKey(0)
    kp, kx, kl = jax.random.split(key, 3)

    params = init_discriminator_params(kp, image_size, image_channel,
                                       std_channel, latent_dim, num_class)
    packed = prepare_params(params, image_size, image_channel, std_channel)

    x = jax.random.normal(kx, (batch, image_channel, image_size, image_size),
                          jnp.float32)
    label = jax.random.randint(kl, (batch,), 0, num_class, jnp.int32)

    out = jax.block_until_ready(discriminator_forward(packed, x, label))
    assert out.shape == (batch, 1), out.shape

    ref = jax.block_until_ready(discriminator_forward_ref(params, x, label))
    assert bool(jnp.allclose(out, ref, rtol=5e-2, atol=2e-2)), (out, ref)

    print("KERNEL_OK")
</pallas_src>

<mosaic_0001>
module attributes {stable_mosaic.version = 11 : i64} {
  func.func @_disc_fused_kernel(%arg0: memref<2x1024xbf16, #tpu.memory_space<vmem>>, %arg1: memref<2x128xbf16, #tpu.memory_space<vmem>>, %arg2: memref<1024x512xbf16, #tpu.memory_space<vmem>>, %arg3: memref<1x512xf32, #tpu.memory_space<vmem>>, %arg4: memref<512x256xbf16, #tpu.memory_space<vmem>>, %arg5: memref<1x256xf32, #tpu.memory_space<vmem>>, %arg6: memref<256x128xbf16, #tpu.memory_space<vmem>>, %arg7: memref<1x128xf32, #tpu.memory_space<vmem>>, %arg8: memref<128x512xbf16, #tpu.memory_space<vmem>>, %arg9: memref<512x128xbf16, #tpu.memory_space<vmem>>, %arg10: memref<1x128xf32, #tpu.memory_space<vmem>>, %arg11: memref<128x512xbf16, #tpu.memory_space<vmem>>, %arg12: memref<1x512xf32, #tpu.memory_space<vmem>>, %arg13: memref<1x512xf32, #tpu.memory_space<vmem>>, %arg14: memref<1x1xf32, #tpu.memory_space<vmem>>, %arg15: memref<2x1xf32, #tpu.memory_space<vmem>>) attributes {dimension_semantics = [], scalar_prefetch = 0 : i64, scratch_operands = 0 : i64, tpu.core_type = #tpu.core_type<tc>} {
    %c0 = arith.constant 0 : index
    %c0_0 = arith.constant 0 : index
    %0 = vector.load %arg0[%c0, %c0_0] : memref<2x1024xbf16, #tpu.memory_space<vmem>>, vector<2x1024xbf16>
    %c0_1 = arith.constant 0 : index
    %c0_2 = arith.constant 0 : index
    %1 = vector.load %arg2[%c0_1, %c0_2] : memref<1024x512xbf16, #tpu.memory_space<vmem>>, vector<1024x512xbf16>
    %cst = arith.constant dense<0.000000e+00> : vector<2x512xf32>
    %2 = tpu.matmul %0, %1, %cst {dimension_numbers = #tpu.dot_dimension_numbers<[1], [0], [0], [1], [0, 0, 1, 1], [], []>} : vector<2x1024xbf16>, vector<1024x512xbf16>, vector<2x512xf32> -> vector<2x512xf32>
    %c0_3 = arith.constant 0 : index
    %c0_4 = arith.constant 0 : index
    %3 = vector.load %arg3[%c0_3, %c0_4] : memref<1x512xf32, #tpu.memory_space<vmem>>, vector<1x512xf32>
    %4 = vector.broadcast %3 : vector<1x512xf32> to vector<2x512xf32>
    %5 = arith.addf %2, %4 : vector<2x512xf32>
    %cst_5 = arith.constant 0.000000e+00 : f32
    %6 = vector.broadcast %cst_5 : f32 to vector<2x512xf32>
    %7 = arith.cmpf oge, %5, %6 : vector<2x512xf32>
    %cst_6 = arith.constant 2.000000e-01 : f32
    %8 = vector.broadcast %cst_6 : f32 to vector<2x512xf32>
    %9 = arith.mulf %8, %5 : vector<2x512xf32>
    %10 = arith.select %7, %5, %9 : vector<2x512xi1>, vector<2x512xf32>
    %11 = arith.truncf %10 : vector<2x512xf32> to vector<2x512xbf16>
    %c0_7 = arith.constant 0 : index
    %c0_8 = arith.constant 0 : index
    %12 = vector.load %arg4[%c0_7, %c0_8] : memref<512x256xbf16, #tpu.memory_space<vmem>>, vector<512x256xbf16>
    %cst_9 = arith.constant dense<0.000000e+00> : vector<2x256xf32>
    %13 = tpu.matmul %11, %12, %cst_9 {dimension_numbers = #tpu.dot_dimension_numbers<[1], [0], [0], [1], [0, 0, 1, 1], [], []>} : vector<2x512xbf16>, vector<512x256xbf16>, vector<2x256xf32> -> vector<2x256xf32>
    %c0_10 = arith.constant 0 : index
    %c0_11 = arith.constant 0 : index
    %14 = vector.load %arg5[%c0_10, %c0_11] : memref<1x256xf32, #tpu.memory_space<vmem>>, vector<1x256xf32>
    %15 = vector.broadcast %14 : vector<1x256xf32> to vector<2x256xf32>
    %16 = arith.addf %13, %15 : vector<2x256xf32>
    %cst_12 = arith.constant 0.000000e+00 : f32
    %17 = vector.broadcast %cst_12 : f32 to vector<2x256xf32>
    %18 = arith.cmpf oge, %16, %17 : vector<2x256xf32>
    %cst_13 = arith.constant 2.000000e-01 : f32
    %19 = vector.broadcast %cst_13 : f32 to vector<2x256xf32>
    %20 = arith.mulf %19, %16 : vector<2x256xf32>
    %21 = arith.select %18, %16, %20 : vector<2x256xi1>, vector<2x256xf32>
    %22 = arith.truncf %21 : vector<2x256xf32> to vector<2x256xbf16>
    %c0_14 = arith.constant 0 : index
    %c0_15 = arith.constant 0 : index
    %23 = vector.load %arg6[%c0_14, %c0_15] : memref<256x128xbf16, #tpu.memory_space<vmem>>, vector<256x128xbf16>
    %cst_16 = arith.constant dense<0.000000e+00> : vector<2x128xf32>
    %24 = tpu.matmul %22, %23, %cst_16 {dimension_numbers = #tpu.dot_dimension_numbers<[1], [0], [0], [1], [0, 0, 1, 1], [], []>} : vector<2x256xbf16>, vector<256x128xbf16>, vector<2x128xf32> -> vector<2x128xf32>
    %c0_17 = arith.constant 0 : index
    %c0_18 = arith.constant 0 : index
    %25 = vector.load %arg7[%c0_17, %c0_18] : memref<1x128xf32, #tpu.memory_space<vmem>>, vector<1x128xf32>
    %26 = vector.broadcast %25 : vector<1x128xf32> to vector<2x128xf32>
    %27 = arith.addf %24, %26 : vector<2x128xf32>
    %cst_19 = arith.constant 0.000000e+00 : f32
    %28 = vector.broadcast %cst_19 : f32 to vector<2x128xf32>
    %29 = arith.cmpf oge, %27, %28 : vector<2x128xf32>
    %cst_20 = arith.constant 2.000000e-01 : f32
    %30 = vector.broadcast %cst_20 : f32 to vector<2x128xf32>
    %31 = arith.mulf %30, %27 : vector<2x128xf32>
    %32 = arith.select %29, %27, %31 : vector<2x128xi1>, vector<2x128xf32>
    %c0_21 = arith.constant 0 : index
    %c0_22 = arith.constant 0 : index
    %33 = vector.load %arg1[%c0_21, %c0_22] : memref<2x128xbf16, #tpu.memory_space<vmem>>, vector<2x128xbf16>
    %c0_23 = arith.constant 0 : index
    %c0_24 = arith.constant 0 : index
    %34 = vector.load %arg8[%c0_23, %c0_24] : memref<128x512xbf16, #tpu.memory_space<vmem>>, vector<128x512xbf16>
    %cst_25 = arith.constant dense<0.000000e+00> : vector<2x512xf32>
    %35 = tpu.matmul %33, %34, %cst_25 {dimension_numbers = #tpu.dot_dimension_numbers<[1], [0], [0], [1], [0, 0, 1, 1], [], []>} : vector<2x128xbf16>, vector<128x512xbf16>, vector<2x512xf32> -> vector<2x512xf32>
    %36 = arith.truncf %35 : vector<2x512xf32> to vector<2x512xbf16>
    %c0_26 = arith.constant 0 : index
    %c0_27 = arith.constant 0 : index
    %37 = vector.load %arg9[%c0_26, %c0_27] : memref<512x128xbf16, #tpu.memory_space<vmem>>, vector<512x128xbf16>
    %cst_28 = arith.constant dense<0.000000e+00> : vector<2x128xf32>
    %38 = tpu.matmul %36, %37, %cst_28 {dimension_numbers = #tpu.dot_dimension_numbers<[1], [0], [0], [1], [0, 0, 1, 1], [], []>} : vector<2x512xbf16>, vector<512x128xbf16>, vector<2x128xf32> -> vector<2x128xf32>
    %c0_29 = arith.constant 0 : index
    %c0_30 = arith.constant 0 : index
    %39 = vector.load %arg10[%c0_29, %c0_30] : memref<1x128xf32, #tpu.memory_space<vmem>>, vector<1x128xf32>
    %40 = vector.broadcast %39 : vector<1x128xf32> to vector<2x128xf32>
    %41 = arith.addf %38, %40 : vector<2x128xf32>
    %cst_31 = arith.constant 0.000000e+00 : f32
    %42 = vector.broadcast %cst_31 : f32 to vector<2x128xf32>
    %43 = arith.cmpf oge, %41, %42 : vector<2x128xf32>
    %cst_32 = arith.constant 2.000000e-01 : f32
    %44 = vector.broadcast %cst_32 : f32 to vector<2x128xf32>
    %45 = arith.mulf %44, %41 : vector<2x128xf32>
    %46 = arith.select %43, %41, %45 : vector<2x128xi1>, vector<2x128xf32>
    %47 = arith.mulf %32, %46 : vector<2x128xf32>
    %48 = arith.truncf %47 : vector<2x128xf32> to vector<2x128xbf16>
    %c0_33 = arith.constant 0 : index
    %c0_34 = arith.constant 0 : index
    %49 = vector.load %arg11[%c0_33, %c0_34] : memref<128x512xbf16, #tpu.memory_space<vmem>>, vector<128x512xbf16>
    %cst_35 = arith.constant dense<0.000000e+00> : vector<2x512xf32>
    %50 = tpu.matmul %48, %49, %cst_35 {dimension_numbers = #tpu.dot_dimension_numbers<[1], [0], [0], [1], [0, 0, 1, 1], [], []>} : vector<2x128xbf16>, vector<128x512xbf16>, vector<2x512xf32> -> vector<2x512xf32>
    %c0_36 = arith.constant 0 : index
    %c0_37 = arith.constant 0 : index
    %51 = vector.load %arg12[%c0_36, %c0_37] : memref<1x512xf32, #tpu.memory_space<vmem>>, vector<1x512xf32>
    %52 = vector.broadcast %51 : vector<1x512xf32> to vector<2x512xf32>
    %53 = arith.addf %50, %52 : vector<2x512xf32>
    %c0_38 = arith.constant 0 : index
    %c0_39 = arith.constant 0 : index
    %54 = vector.load %arg13[%c0_38, %c0_39] : memref<1x512xf32, #tpu.memory_space<vmem>>, vector<1x512xf32>
    %55 = vector.broadcast %54 : vector<1x512xf32> to vector<2x512xf32>
    %56 = arith.mulf %53, %55 : vector<2x512xf32>
    %cst_40 = arith.constant dense<0.000000e+00> : vector<2xf32>
    %57 = vector.multi_reduction <add>, %56, %cst_40 [1] : vector<2x512xf32> to vector<2xf32>
    %58 = vector.shape_cast %57 : vector<2xf32> to vector<2x1xf32>
    %c0_41 = arith.constant 0 : index
    %c0_42 = arith.constant 0 : index
    %59 = vector.load %arg14[%c0_41, %c0_42] : memref<1x1xf32, #tpu.memory_space<vmem>>, vector<1x1xf32>
    %60 = vector.broadcast %59 : vector<1x1xf32> to vector<2x1xf32>
    %61 = arith.addf %58, %60 : vector<2x1xf32>
    %c0_43 = arith.constant 0 : index
    %c0_44 = arith.constant 0 : index
    %62 = vector.load %arg15[%c0_43, %c0_44] : memref<2x1xf32, #tpu.memory_space<vmem>>, vector<2x1xf32>
    tpu.vector_store %arg15[%c0_43, %c0_44], %61 {strides = array<i32>} : memref<2x1xf32, #tpu.memory_space<vmem>>, vector<2x1xf32>,
    return
  }
}

</mosaic_0001>

<bundles_post_ra>
// kernel: discriminator_forward.1
= control target key start
LH: loop header
LB: loop body
LE: loop exit
PB: predicated region body
PF: predicated region fallthrough
CT: control target
= control target key end

     0   :  { %s5377_s0 = inlined_call_operand.vmem [shape: bf16[2,1024], index: 0, kind: input, shape index: {}]   ;;  %s5378_s1 = inlined_call_operand.vmem [shape: bf16[2,128], index: 1, kind: input, shape index: {}]   ;;  %s5379_s2 = inlined_call_operand.hbm [shape: bf16[1024,512], index: 2, kind: input, shape index: {}]   ;;  %s5380_s3 = inlined_call_operand.vmem [shape: f32[1,512], index: 3, kind: input, shape index: {}]   ;;  %s5381_s4 = inlined_call_operand.hbm [shape: bf16[512,256], index: 4, kind: input, shape index: {}]   ;;  %s5382_s5 = inlined_call_operand.vmem [shape: f32[1,256], index: 5, kind: input, shape index: {}]   ;;  %s5383_s6 = inlined_call_operand.hbm [shape: bf16[256,128], index: 6, kind: input, shape index: {}]   ;;  %s5384_s7 = inlined_call_operand.vmem [shape: f32[1,128], index: 7, kind: input, shape index: {}]   ;;  %s5385_s8 = inlined_call_operand.vmem [shape: bf16[128,512], index: 8, kind: input, shape index: {}]   ;;  %s5386_s9 = inlined_call_operand.hbm [shape: bf16[512,128], index: 9, kind: input, shape index: {}]   ;;  %s5387_s10 = inlined_call_operand.vmem [shape: f32[1,128], index: 10, kind: input, shape index: {}]   ;;  %s5388_s11 = inlined_call_operand.hbm [shape: bf16[128,512], index: 11, kind: input, shape index: {}]   ;;  %s5389_s12 = inlined_call_operand.vmem [shape: f32[1,512], index: 12, kind: input, shape index: {}]   ;;  %s5390_s13 = inlined_call_operand.vmem [shape: f32[1,512], index: 13, kind: input, shape index: {}]   ;;  %s5391_s14 = inlined_call_operand.<no memory space> [shape: f32[1,1], index: 14, kind: input, shape index: {}]   ;;  %s5392_s15 = inlined_call_operand.vmem [shape: f32[2,1], index: 15, kind: output, shape index: {}]  }
   0x1   :  { %v20_v0 = vstv %s5391_s14 }
   0x2   :  { %21 = vst [vmem:[#allocation2] sm:$0x1] %v20_v0 }
   0x3   :  { %22 = vsyncpa [#allocation4], 0 }
   0x4   :  { %23 = vsyncpa [#allocation6], 0 }
   0x5   :  { %24 = vsyncpa [#allocation9], 0  ;;  %s5011_s20 = smov [#allocation5]   ;;  %s4895_s24 = scalar_lea.hbm %s5381_s4, 8192 }
   0x6   :  { %s48_s21 = sshll.u32 %s5011_s20, 4  ;;  %p4896_p0 = scmp.ne.s32.totalorder %s5381_s4, %s4895_s24  ;;  %s49_s21 = int_to_ptr.vmem [resolvable:$true] %s48_s21 }
   0x7   :  { %p4899_p1 = scmp.lt.u32.totalorder %s4895_s24, %s5381_s4 }
   0x9   :  { %p4901_p2 = pnand %p4899_p1, %p4896_p0 }
   0xb   :  { %4904 = shalt.err (!%p4901_p2)
}
   0xc   :  { %s4905_s14 = scalar_lea.vmem %s49_s21, 8192  ;;  %p4910_p4 = scmp.lt.s32.totalorder %s49_s21, %s49_s21 }
   0xd   :  { %p4906_p3 = scmp.ne.s32.totalorder %s49_s21, %s4905_s14  ;;  %p4911_p5 = scmp.lt.s32.totalorder %s4905_s14, %s4905_s14 }
   0xf   :  { %p4912_p6 = por %p4911_p5, %p4910_p4 }
  0x11   :  { %p4913_p7 = pnand %p4912_p6, %p4906_p3 }
  0x13   :  { %4916 = shalt.err (!%p4913_p7)
}
  0x14   :  { %s5012_s29 = smov 128   ;;  %s5013_s30 = smov 8  }
  0x15   :  { %54 = dma.hbm_to_vmem [thread:$0]  %s5381_s4, 8192, %s49_s21, [#allocation6], %s5012_s29, %s5012_s29, %s5013_s30  }
  0x16   :  { %s5014_s18 = smov [#allocation8]   ;;  %s5015_s20 = smov [#allocation3]  }
  0x17   :  { %s78_s19 = sshll.u32 %s5014_s18, 4  ;;  %s34_s22 = sshll.u32 %s5015_s20, 4  ;;  %s79_s19 = int_to_ptr.vmem [resolvable:$true] %s78_s19  ;;  %s35_s22 = int_to_ptr.vmem [resolvable:$true] %s34_s22 }
  0x18   :  { %s4917_s25 = scalar_lea.hbm %s5386_s9, 4096 }
  0x19   :  { %p4918_p8 = scmp.ne.s32.totalorder %s5386_s9, %s4917_s25  ;;  %p4921_p9 = scmp.lt.u32.totalorder %s4917_s25, %s5386_s9 }
  0x1b   :  { %p4923_p10 = pnand %p4921_p9, %p4918_p8 }
  0x1d   :  { %4926 = shalt.err (!%p4923_p10)
}
  0x1e   :  { %s4927_s4 = scalar_lea.vmem %s79_s19, 4096  ;;  %p4932_p12 = scmp.lt.s32.totalorder %s79_s19, %s79_s19 }
  0x1f   :  { %p4928_p11 = scmp.ne.s32.totalorder %s79_s19, %s4927_s4  ;;  %p4933_p13 = scmp.lt.s32.totalorder %s4927_s4, %s4927_s4 }
  0x21   :  { %p4934_p0 = por %p4933_p13, %p4932_p12 }
  0x23   :  { %p4935_p1 = pnand %p4934_p0, %p4928_p11 }
  0x25   :  { %4938 = shalt.err (!%p4935_p1)
}
  0x26   :  { %s5016_s21 = smov 64   ;;  %s5017_s29 = smov 4  }
  0x27   :  { %84 = dma.hbm_to_vmem [thread:$0]  %s5386_s9, 4096, %s79_s19, [#allocation9], %s5016_s21, %s5016_s21, %s5017_s29  }
  0x28   :  { %s4939_s20 = scalar_lea.hbm %s5379_s2, 32768 }
  0x29   :  { %p4940_p2 = scmp.ne.s32.totalorder %s5379_s2, %s4939_s20  ;;  %p4943_p3 = scmp.lt.u32.totalorder %s4939_s20, %s5379_s2 }
  0x2b   :  { %p4945_p4 = pnand %p4943_p3, %p4940_p2 }
  0x2d   :  { %4948 = shalt.err (!%p4945_p4)
}
  0x2e   :  { %s4949_s27 = scalar_lea.vmem %s35_s22, 32768  ;;  %p4954_p6 = scmp.lt.s32.totalorder %s35_s22, %s35_s22 }
  0x2f   :  { %p4950_p5 = scmp.ne.s32.totalorder %s35_s22, %s4949_s27  ;;  %p4955_p7 = scmp.lt.s32.totalorder %s4949_s27, %s4949_s27 }
  0x31   :  { %p4956_p8 = por %p4955_p7, %p4954_p6 }
  0x33   :  { %p4957_p9 = pnand %p4956_p8, %p4950_p5 }
  0x35   :  { %4960 = shalt.err (!%p4957_p9)
}
  0x36   :  { %s5018_s9 = smov 256   ;;  %s5019_s19 = smov 16  }
  0x37   :  { %40 = dma.hbm_to_vmem [thread:$0]  %s5379_s2, 32768, %s35_s22, [#allocation4], %s5018_s9, %s5018_s9, %s5019_s19  }
  0x38   :  { %s5020_s4 = smov [#allocation7]   ;;  %s5021_s16 = smov [#allocation10]  }
  0x39   :  { %s62_s30 = sshll.u32 %s5020_s4, 4  ;;  %s92_s17 = sshll.u32 %s5021_s16, 4  ;;  %s63_s30 = int_to_ptr.vmem [resolvable:$true] %s62_s30  ;;  %s93_s17 = int_to_ptr.vmem [resolvable:$true] %s92_s17 }
  0x3a   :  { %s4961_s23 = scalar_lea.hbm %s5383_s6, 2048 }
  0x3b   :  { %p4962_p10 = scmp.ne.s32.totalorder %s5383_s6, %s4961_s23  ;;  %p4965_p11 = scmp.lt.u32.totalorder %s4961_s23, %s5383_s6 }
  0x3d   :  { %p4967_p12 = pnand %p4965_p11, %p4962_p10 }
  0x3f   :  { %4970 = shalt.err (!%p4967_p12)
}
  0x40   :  { %s4971_s2 = scalar_lea.vmem %s63_s30, 2048  ;;  %p4976_p0 = scmp.lt.s32.totalorder %s63_s30, %s63_s30 }
  0x41   :  { %p4972_p13 = scmp.ne.s32.totalorder %s63_s30, %s4971_s2  ;;  %p4977_p1 = scmp.lt.s32.totalorder %s4971_s2, %s4971_s2 }
  0x43   :  { %p4978_p2 = por %p4977_p1, %p4976_p0 }
  0x45   :  { %p4979_p3 = pnand %p4978_p2, %p4972_p13 }
  0x47   :  { %4982 = shalt.err (!%p4979_p3)
}
  0x48   :  { %68 = dma.hbm_to_vmem [thread:$0]  %s5383_s6, 2048, %s63_s30, [#allocation6], %s5016_s21, %s5016_s21, %s5017_s29  }
  0x49   :  { %s4983_s16 = scalar_lea.hbm %s5388_s11, 4096 }
  0x4a   :  { %p4984_p4 = scmp.ne.s32.totalorder %s5388_s11, %s4983_s16  ;;  %p4987_p5 = scmp.lt.u32.totalorder %s4983_s16, %s5388_s11 }
  0x4c   :  { %p4989_p6 = pnand %p4987_p5, %p4984_p4 }
  0x4e   :  { %4992 = shalt.err (!%p4989_p6)
}
  0x4f   :  { %s4993_s25 = scalar_lea.vmem %s93_s17, 4096  ;;  %p4998_p8 = scmp.lt.s32.totalorder %s93_s17, %s93_s17 }
  0x50   :  { %p4994_p7 = scmp.ne.s32.totalorder %s93_s17, %s4993_s25  ;;  %p4999_p9 = scmp.lt.s32.totalorder %s4993_s25, %s4993_s25 }
  0x52   :  { %p5000_p10 = por %p4999_p9, %p4998_p8 }
  0x54   :  { %p5001_p11 = pnand %p5000_p10, %p4994_p7 }
  0x56   :  { %5004 = shalt.err (!%p5001_p11)
}
  0x57   :  { %98 = dma.hbm_to_vmem [thread:$0]  %s5388_s11, 4096, %s93_s17, [#allocation9], %s5018_s9, %s5018_s9, %s5019_s19  }
  0x58   :  { %5005 = dma.done.wait [#allocation4], 32768  }
  0x59   :  { %5006 = vsyncadd [#allocation4], 4294934528 }
  0x5a   :  { %5007 = dma.done.wait [#allocation6], 10240  }
  0x5b   :  { %5008 = vsyncadd [#allocation6], 4294957056 }
  0x5c   :  { %5009 = dma.done.wait [#allocation9], 8192  }
  0x5d   :  { %5010 = vsyncadd [#allocation9], 4294959104  ;;  %v4270_v1 = vld [vmem:[#allocation3 + $0x4] ss:$16 sps:$4 sm:$0xff]   ;;  %v4272_v2 = vld [vmem:[#allocation3 + $0xc] ss:$16 sps:$4 sm:$0xff]   ;;  %v380_v37 = vlaneseq }
  0x5e   :  { %1738 = vmatprep.subr.bf16.mxu0 %v4270_v1  ;;  %v4274_v3 = vld [vmem:[#allocation3] ss:$16 sps:$4 sm:$0xff]   ;;  %v4275_v4 = vld [vmem:[#allocation3 + $0x8] ss:$16 sps:$4 sm:$0xff]   ;;  %1902 = vmatprep.subr.bf16.mxu1 %v4272_v2  ;;  %v4276_v5 = vld [vmem:[#allocation3 + $0x24] ss:$16 sps:$4 sm:$0xff]  }
  0x5f   :  { %1739 = vmatpush1.bf16.msra.mxu0 %v4274_v3  ;;  %1903 = vmatpush1.bf16.msra.mxu1 %v4275_v4  ;;  %v4278_v6 = vld [vmem:[#allocation3 + $0x2c] ss:$16 sps:$4 sm:$0xff]   ;;  %v4280_v7 = vld [vmem:[#allocation3 + $0x20] ss:$16 sps:$4 sm:$0xff]   ;;  %v4281_v8 = vld [vmem:[#allocation3 + $0x28] ss:$16 sps:$4 sm:$0xff]  }
  0x60   :  { %1740 = vmatprep.subr.bf16.mxu0 %v4276_v5  ;;  %1904 = vmatprep.subr.bf16.mxu1 %v4278_v6  ;;  %v4282_v9 = vld [vmem:[#allocation3 + $0x44] ss:$16 sps:$4 sm:$0xff]   ;;  %v4284_v10 = vld [vmem:[#allocation3 + $0x4c] ss:$16 sps:$4 sm:$0xff]   ;;  %v4286_v11 = vld [vmem:[#allocation3 + $0x40] ss:$16 sps:$4 sm:$0xff]  }
  0x61   :  { %v4287_v12 = vld [vmem:[#allocation3 + $0x48] ss:$16 sps:$4 sm:$0xff]   ;;  %v4288_v13 = vld [vmem:[#allocation3 + $0x64] ss:$16 sps:$4 sm:$0xff]   ;;  %v4290_v14 = vld [vmem:[#allocation3 + $0x6c] ss:$16 sps:$4 sm:$0xff]  }
  0x62   :  { %v4292_v15 = vld [vmem:[#allocation3 + $0x60] ss:$16 sps:$4 sm:$0xff]   ;;  %v4293_v16 = vld [vmem:[#allocation3 + $0x68] ss:$16 sps:$4 sm:$0xff]   ;;  %v4294_v17 = vld [vmem:[#allocation3 + $0x84] ss:$16 sps:$4 sm:$0xff]  }
  0x63   :  { %1741 = vmatpush1.bf16.msra.mxu0 %v4280_v7  ;;  %1905 = vmatpush1.bf16.msra.mxu1 %v4281_v8  ;;  %v4296_v18 = vld [vmem:[#allocation3 + $0x8c] ss:$16 sps:$4 sm:$0xff]   ;;  %v4298_v19 = vld [vmem:[#allocation3 + $0x80] ss:$16 sps:$4 sm:$0xff]   ;;  %v4299_v20 = vld [vmem:[#allocation3 + $0x88] ss:$16 sps:$4 sm:$0xff]  }
  0x64   :  { %1742 = vmatprep.subr.bf16.mxu0 %v4282_v9  ;;  %1906 = vmatprep.subr.bf16.mxu1 %v4284_v10  ;;  %v4300_v21 = vld [vmem:[#allocation3 + $0xa4] ss:$16 sps:$4 sm:$0xff]   ;;  %v4302_v22 = vld [vmem:[#allocation3 + $0xac] ss:$16 sps:$4 sm:$0xff]   ;;  %v4304_v23 = vld [vmem:[#allocation3 + $0xa0] ss:$16 sps:$4 sm:$0xff]  }
  0x65   :  { %v4305_v24 = vld [vmem:[#allocation3 + $0xa8] ss:$16 sps:$4 sm:$0xff]   ;;  %v4306_v25 = vld [vmem:[#allocation3 + $0xc4] ss:$16 sps:$4 sm:$0xff]   ;;  %v4308_v26 = vld [vmem:[#allocation3 + $0xcc] ss:$16 sps:$4 sm:$0xff]  }
  0x66   :  { %v4310_v27 = vld [vmem:[#allocation3 + $0xc0] ss:$16 sps:$4 sm:$0xff]   ;;  %v4311_v28 = vld [vmem:[#allocation3 + $0xc8] ss:$16 sps:$4 sm:$0xff]   ;;  %v4312_v29 = vld [vmem:[#allocation3 + $0xe4] ss:$16 sps:$4 sm:$0xff]  }
  0x67   :  { %1743 = vmatpush1.bf16.msra.mxu0 %v4286_v11  ;;  %1907 = vmatpush1.bf16.msra.mxu1 %v4287_v12  ;;  %v4314_v30 = vld [vmem:[#allocation3 + $0xec] ss:$16 sps:$4 sm:$0xff]   ;;  %v4316_v31 = vld [vmem:[#allocation3 + $0xe0] ss:$16 sps:$4 sm:$0xff]   ;;  %v4317_v32 = vld [vmem:[#allocation3 + $0xe8] ss:$16 sps:$4 sm:$0xff]  }
  0x68   :  { %1744 = vmatprep.subr.bf16.mxu0 %v4288_v13  ;;  %1908 = vmatprep.subr.bf16.mxu1 %v4290_v14  ;;  %v4318_v33 = vld [vmem:[#allocation3 + $0x104] ss:$16 sps:$4 sm:$0xff]   ;;  %v4320_v34 = vld [vmem:[#allocation3 + $0x10c] ss:$16 sps:$4 sm:$0xff]   ;;  %v4322_v35 = vld [vmem:[#allocation3 + $0x100] ss:$16 sps:$4 sm:$0xff]  }
  0x69   :  { %v4323_v36 = vld [vmem:[#allocation3 + $0x108] ss:$16 sps:$4 sm:$0xff]   ;;  %v5022_v38 = vmov 1966171168   ;;  %v4324_v40 = vld [vmem:[#allocation3 + $0x124] ss:$16 sps:$4 sm:$0xff]  }
  0x6a   :  { %v403_v39 = vunpack.c.l.s4 %v5022_v38  ;;  %v4326_v41 = vld [vmem:[#allocation3 + $0x12c] ss:$16 sps:$4 sm:$0xff]   ;;  %v4328_v42 = vld [vmem:[#allocation3 + $0x120] ss:$16 sps:$4 sm:$0xff]   ;;  %v5179_v43 = vshrl.u32 %v380_v37, 7  ;;  %vm3695_vm8 = vcmask 1041408  }
  0x6b   :  { %1745 = vmatpush1.bf16.msra.mxu0 %v4292_v15  ;;  %1909 = vmatpush1.bf16.msra.mxu1 %v4293_v16  ;;  %v4329_v45 = vld [vmem:[#allocation3 + $0x128] ss:$16 sps:$4 sm:$0xff]   ;;  %v4330_v46 = vld [vmem:[#allocation3 + $0x144] ss:$16 sps:$4 sm:$0xff]   ;;  %v4332_v47 = vld [vmem:[#allocation3 + $0x14c] ss:$16 sps:$4 sm:$0xff]  }
  0x6c   :  { %1746 = vmatprep.subr.bf16.mxu0 %v4294_v17  ;;  %1910 = vmatprep.subr.bf16.mxu1 %v4296_v18  ;;  %v404_v44 = vunpack.c.0.s8 %v403_v39  ;;  %v4334_v48 = vld [vmem:[#allocation3 + $0x140] ss:$16 sps:$4 sm:$0xff]   ;;  %v4335_v49 = vld [vmem:[#allocation3 + $0x148] ss:$16 sps:$4 sm:$0xff]   ;;  %v4336_v51 = vld [vmem:[#allocation3 + $0x164] ss:$16 sps:$4 sm:$0xff]  }
  0x6d   :  { %v4338_v52 = vld [vmem:[#allocation3 + $0x16c] ss:$16 sps:$4 sm:$0xff]   ;;  %v4340_v54 = vld [vmem:[#allocation3 + $0x160] ss:$16 sps:$4 sm:$0xff]   ;;  %v4341_v56 = vld [vmem:[#allocation3 + $0x168] ss:$16 sps:$4 sm:$0xff]  }
  0x6e   :  { %v5182_v50 = vsub.s32 %v404_v44, %v5179_v43  ;;  %v121_v53 = vld [vmem:[%s5377_s0] sm:$0xff]  ;;  %v4347_v62 = vld [vmem:[#allocation3 + $0x188] ss:$16 sps:$4 sm:$0xff]   ;;  %vm3713_vm9 = vcmask 1024  }
  0x6f   :  { %1747 = vmatpush1.bf16.msra.mxu0 %v4298_v19  ;;  %1911 = vmatpush1.bf16.msra.mxu1 %v4299_v20  ;;  %v4342_v57 = vld [vmem:[#allocation3 + $0x184] ss:$16 sps:$4 sm:$0xff]   ;;  %v4344_v58 = vld [vmem:[#allocation3 + $0x18c] ss:$16 sps:$4 sm:$0xff]   ;;  %v4346_v60 = vld [vmem:[#allocation3 + $0x180] ss:$16 sps:$4 sm:$0xff]   ;;  %v401_v10 = vcombine.high %v121_v53, %v121_v53 }
  0x70   :  { %1748 = vmatprep.subr.bf16.mxu0 %v4300_v21  ;;  %1912 = vmatprep.subr.bf16.mxu1 %v4302_v22  ;;  %v408_v55 = vrot.slane %v121_v53, %v5182_v50  ;;  %v4348_v63 = vld [vmem:[#allocation3 + $0x1a4] ss:$16 sps:$4 sm:$0xff]   ;;  %v4350_v0 = vld [vmem:[#allocation3 + $0x1ac] ss:$16 sps:$4 sm:$0xff]   ;;  %v4352_v1 = vld [vmem:[#allocation3 + $0x1a0] ss:$16 sps:$4 sm:$0xff]  }
  0x71   :  { %v4353_v2 = vld [vmem:[#allocation3 + $0x1a8] ss:$16 sps:$4 sm:$0xff]   ;;  %v4354_v3 = vld [vmem:[#allocation3 + $0x1c4] ss:$16 sps:$4 sm:$0xff]   ;;  %v4356_v4 = vld [vmem:[#allocation3 + $0x1cc] ss:$16 sps:$4 sm:$0xff]   ;;  %v415_v14 = vrot.slane %v401_v10, %v5182_v50 }
  0x72   :  { %v416_v59 = vcombine.high %v408_v55, %v408_v55  ;;  %v4358_v5 = vld [vmem:[#allocation3 + $0x1c0] ss:$16 sps:$4 sm:$0xff]   ;;  %v4359_v6 = vld [vmem:[#allocation3 + $0x1c8] ss:$16 sps:$4 sm:$0xff]   ;;  %v4360_v7 = vld [vmem:[#allocation3 + $0x1e4] ss:$16 sps:$4 sm:$0xff]   ;;  %v5191_v16 = vrot.slane %v408_v55, %v5182_v50 }
  0x73   :  { %1749 = vmatpush1.bf16.msra.mxu0 %v4304_v23  ;;  %1913 = vmatpush1.bf16.msra.mxu1 %v4305_v24  ;;  %v4362_v8 = vld [vmem:[#allocation3 + $0x1ec] ss:$16 sps:$4 sm:$0xff]   ;;  %v4364_v9 = vld [vmem:[#allocation3 + $0x1e0] ss:$16 sps:$4 sm:$0xff]   ;;  %v4365_v11 = vld [vmem:[#allocation3 + $0x1e8] ss:$16 sps:$4 sm:$0xff]   ;;  %v417_v17 = vcombine.high %v415_v14, %v415_v14  ;;  %v5197_v22 = vrot.slane %v415_v14, %v5182_v50 }
  0x74   :  { %1750 = vmatprep.subr.bf16.mxu0 %v4306_v25  ;;  %1914 = vmatprep.subr.bf16.mxu1 %v4308_v26  ;;  %v438_v61 = vrot.slane %v416_v59, %v5182_v50  ;;  %v4368_v12 = vld [vmem:[#allocation3 + $0x204] ss:$16 sps:$4 sm:$0xff]   ;;  %v4371_v13 = vld [vmem:[#allocation3 + $0x20c] ss:$16 sps:$4 sm:$0xff]   ;;  %v4366_v15 = vld [vmem:[#allocation3 + $0x200] ss:$16 sps:$4 sm:$0xff]  }
  0x75   :  { %v4369_v18 = vld [vmem:[#allocation3 + $0x208] ss:$16 sps:$4 sm:$0xff]   ;;  %v4374_v19 = vld [vmem:[#allocation3 + $0x224] ss:$16 sps:$4 sm:$0xff]   ;;  %v4377_v20 = vld [vmem:[#allocation3 + $0x22c] ss:$16 sps:$4 sm:$0xff]   ;;  %v5194_v21 = vrot.slane %v417_v17, %v5182_v50 }
  0x76   :  { %1770 = vmatprep.mubr.bf16.mxu0 %v438_v61  ;;  %1934 = vmatprep.mubr.bf16.mxu1 %v438_v61  ;;  %v448_v23 = vcombine.high %v438_v61, %v438_v61  ;;  %v4372_v24 = vld [vmem:[#allocation3 + $0x220] ss:$16 sps:$4 sm:$0xff]   ;;  %v4375_v25 = vld [vmem:[#allocation3 + $0x228] ss:$16 sps:$4 sm:$0xff]   ;;  %v4380_v26 = vld [vmem:[#allocation3 + $0x244] ss:$16 sps:$4 sm:$0xff]  }
  0x77   :  { %1751 = vmatpush1.bf16.msra.mxu0 %v4310_v27  ;;  %1915 = vmatpush1.bf16.msra.mxu1 %v4311_v28  ;;  %v4383_v27 = vld [vmem:[#allocation3 + $0x24c] ss:$16 sps:$4 sm:$0xff]   ;;  %v4378_v28 = vld [vmem:[#allocation3 + $0x240] ss:$16 sps:$4 sm:$0xff]   ;;  %v4393_v37 = vld [vmem:[#allocation3 + $0x288] ss:$16 sps:$4 sm:$0xff]  }
  0x78   :  { %1752 = vmatprep.subr.bf16.mxu0 %v4312_v29  ;;  %1916 = vmatprep.subr.bf16.mxu1 %v4314_v30  ;;  %v4381_v29 = vld [vmem:[#allocation3 + $0x248] ss:$16 sps:$4 sm:$0xff]   ;;  %v4386_v30 = vld [vmem:[#allocation3 + $0x264] ss:$16 sps:$4 sm:$0xff]   ;;  %v4401_v39 = vld [vmem:[#allocation3 + $0x2ac] ss:$16 sps:$4 sm:$0xff]  }
  0x79   :  { %v4398_v38 = vld [vmem:[#allocation3 + $0x2a4] ss:$16 sps:$4 sm:$0xff]   ;;  %v4407_v44 = vld [vmem:[#allocation3 + $0x2cc] ss:$16 sps:$4 sm:$0xff]   ;;  %v4411_v50 = vld [vmem:[#allocation3 + $0x2e8] ss:$16 sps:$4 sm:$0xff]  }
  0x7a   :  { %v4414_v53 = vld [vmem:[#allocation3 + $0x300] ss:$16 sps:$4 sm:$0xff]   ;;  %v4422_v55 = vld [vmem:[#allocation3 + $0x324] ss:$16 sps:$4 sm:$0xff]   ;;  %v4447_v10 = vld [vmem:[#allocation3 + $0x3a8] ss:$16 sps:$4 sm:$0xff]  }
  0x7b   :  { %1753 = vmatpush1.bf16.msra.mxu0 %v4316_v31  ;;  %1917 = vmatpush1.bf16.msra.mxu1 %v4317_v32  ;;  %v4389_v31 = vld [vmem:[#allocation3 + $0x26c] ss:$16 sps:$4 sm:$0xff]   ;;  %v4384_v32 = vld [vmem:[#allocation3 + $0x260] ss:$16 sps:$4 sm:$0xff]   ;;  %v4428_v59 = vld [vmem:[#allocation3 + $0x344] ss:$16 sps:$4 sm:$0xff]  }
  0x7c   :  { %1754 = vmatprep.subr.bf16.mxu0 %v4318_v33  ;;  %1918 = vmatprep.subr.bf16.mxu1 %v4320_v34  ;;  %v4387_v33 = vld [vmem:[#allocation3 + $0x268] ss:$16 sps:$4 sm:$0xff]   ;;  %v4392_v34 = vld [vmem:[#allocation3 + $0x284] ss:$16 sps:$4 sm:$0xff]   ;;  %v4426_v61 = vld [vmem:[#allocation3 + $0x340] ss:$16 sps:$4 sm:$0xff]  }
  0x7d   :  { %v4453_v14 = vld [vmem:[#allocation3 + $0x3c8] ss:$16 sps:$4 sm:$0xff]   ;;  %v4461_v17 = vld [vmem:[#allocation3 + $0x3ec] ss:$16 sps:$4 sm:$0xff]  }
  0x7f   :  { %1755 = vmatpush1.bf16.msra.mxu0 %v4322_v35  ;;  %1919 = vmatpush1.bf16.msra.mxu1 %v4323_v36  ;;  %v4395_v35 = vld [vmem:[#allocation3 + $0x28c] ss:$16 sps:$4 sm:$0xff]   ;;  %v4390_v36 = vld [vmem:[#allocation3 + $0x280] ss:$16 sps:$4 sm:$0xff]  }
  0x80   :  { %1756 = vmatprep.subr.bf16.mxu0 %v4324_v40  ;;  %1920 = vmatprep.subr.bf16.mxu1 %v4326_v41  ;;  %v4396_v40 = vld [vmem:[#allocation3 + $0x2a0] ss:$16 sps:$4 sm:$0xff]   ;;  %v4399_v41 = vld [vmem:[#allocation3 + $0x2a8] ss:$16 sps:$4 sm:$0xff]  }
  0x83   :  { %1757 = vmatpush1.bf16.msra.mxu0 %v4328_v42  ;;  %1921 = vmatpush1.bf16.msra.mxu1 %v4329_v45  ;;  %v4404_v42 = vld [vmem:[#allocation3 + $0x2c4] ss:$16 sps:$4 sm:$0xff]   ;;  %v4402_v45 = vld [vmem:[#allocation3 + $0x2c0] ss:$16 sps:$4 sm:$0xff]  }
  0x84   :  { %1758 = vmatprep.subr.bf16.mxu0 %v4330_v46  ;;  %1922 = vmatprep.subr.bf16.mxu1 %v4332_v47  ;;  %v4405_v46 = vld [vmem:[#allocation3 + $0x2c8] ss:$16 sps:$4 sm:$0xff]   ;;  %v4410_v47 = vld [vmem:[#allocation3 + $0x2e4] ss:$16 sps:$4 sm:$0xff]  }
  0x87   :  { %1759 = vmatpush1.bf16.msra.mxu0 %v4334_v48  ;;  %1923 = vmatpush1.bf16.msra.mxu1 %v4335_v49  ;;  %v4413_v48 = vld [vmem:[#allocation3 + $0x2ec] ss:$16 sps:$4 sm:$0xff]   ;;  %v4408_v49 = vld [vmem:[#allocation3 + $0x2e0] ss:$16 sps:$4 sm:$0xff]  }
  0x88   :  { %1760 = vmatprep.subr.bf16.mxu0 %v4336_v51  ;;  %1924 = vmatprep.subr.bf16.mxu1 %v4338_v52  ;;  %v4416_v51 = vld [vmem:[#allocation3 + $0x304] ss:$16 sps:$4 sm:$0xff]   ;;  %v4419_v52 = vld [vmem:[#allocation3 + $0x30c] ss:$16 sps:$4 sm:$0xff]  }
  0x8b   :  { %1761 = vmatpush1.bf16.msra.mxu0 %v4340_v54  ;;  %1925 = vmatpush1.bf16.msra.mxu1 %v4341_v56  ;;  %v4417_v54 = vld [vmem:[#allocation3 + $0x308] ss:$16 sps:$4 sm:$0xff]   ;;  %v4425_v56 = vld [vmem:[#allocation3 + $0x32c] ss:$16 sps:$4 sm:$0xff]  }
  0x8c   :  { %1762 = vmatprep.subr.bf16.mxu0 %v4342_v57  ;;  %1926 = vmatprep.subr.bf16.mxu1 %v4344_v58  ;;  %v4420_v57 = vld [vmem:[#allocation3 + $0x320] ss:$16 sps:$4 sm:$0xff]   ;;  %v4423_v58 = vld [vmem:[#allocation3 + $0x328] ss:$16 sps:$4 sm:$0xff]  }
  0x8f   :  { %1763 = vmatpush1.bf16.msra.mxu0 %v4346_v60  ;;  %1927 = vmatpush1.bf16.msra.mxu1 %v4347_v62  ;;  %v4431_v60 = vld [vmem:[#allocation3 + $0x34c] ss:$16 sps:$4 sm:$0xff]   ;;  %v4429_v62 = vld [vmem:[#allocation3 + $0x348] ss:$16 sps:$4 sm:$0xff]  }
  0x90   :  { %1764 = vmatprep.subr.bf16.mxu0 %v4348_v63  ;;  %1928 = vmatprep.subr.bf16.mxu1 %v4350_v0  ;;  %v4434_v63 = vld [vmem:[#allocation3 + $0x364] ss:$16 sps:$4 sm:$0xff]   ;;  %v4437_v0 = vld [vmem:[#allocation3 + $0x36c] ss:$16 sps:$4 sm:$0xff]  }
  0x93   :  { %1765 = vmatpush1.bf16.msra.mxu0 %v4352_v1  ;;  %1929 = vmatpush1.bf16.msra.mxu1 %v4353_v2  ;;  %v4432_v1 = vld [vmem:[#allocation3 + $0x360] ss:$16 sps:$4 sm:$0xff]   ;;  %v4435_v2 = vld [vmem:[#allocation3 + $0x368] ss:$16 sps:$4 sm:$0xff]  }
  0x94   :  { %1766 = vmatprep.subr.bf16.mxu0 %v4354_v3  ;;  %1930 = vmatprep.subr.bf16.mxu1 %v4356_v4  ;;  %v4440_v3 = vld [vmem:[#allocation3 + $0x384] ss:$16 sps:$4 sm:$0xff]   ;;  %v4443_v4 = vld [vmem:[#allocation3 + $0x38c] ss:$16 sps:$4 sm:$0xff]  }
  0x97   :  { %1767 = vmatpush1.bf16.msra.mxu0 %v4358_v5  ;;  %1931 = vmatpush1.bf16.msra.mxu1 %v4359_v6  ;;  %v4438_v5 = vld [vmem:[#allocation3 + $0x380] ss:$16 sps:$4 sm:$0xff]   ;;  %v4441_v6 = vld [vmem:[#allocation3 + $0x388] ss:$16 sps:$4 sm:$0xff]  }
  0x98   :  { %1768 = vmatprep.subr.bf16.mxu0 %v4360_v7  ;;  %1932 = vmatprep.subr.bf16.mxu1 %v4362_v8  ;;  %v4446_v7 = vld [vmem:[#allocation3 + $0x3a4] ss:$16 sps:$4 sm:$0xff]   ;;  %v4449_v8 = vld [vmem:[#allocation3 + $0x3ac] ss:$16 sps:$4 sm:$0xff]  }
  0x9b   :  { %1769 = vmatpush1.bf16.msra.mxu0 %v4364_v9  ;;  %1933 = vmatpush1.bf16.msra.mxu1 %v4365_v11  ;;  %v4444_v9 = vld [vmem:[#allocation3 + $0x3a0] ss:$16 sps:$4 sm:$0xff]   ;;  %v4452_v11 = vld [vmem:[#allocation3 + $0x3c4] ss:$16 sps:$4 sm:$0xff]  }
  0x9c   :  { %1779 = vmatprep.subr.bf16.mxu0 %v4368_v12  ;;  %1943 = vmatprep.subr.bf16.mxu1 %v4371_v13  ;;  %v4455_v12 = vld [vmem:[#allocation3 + $0x3cc] ss:$16 sps:$4 sm:$0xff]   ;;  %v4450_v13 = vld [vmem:[#allocation3 + $0x3c0] ss:$16 sps:$4 sm:$0xff]  }
  0x9e   :  { %1771 = vmatmul.mubr.bf16.vlgmr.msra.gmra.mrb[0].mxu0 %v5191_v16  ;;  %1935 = vmatmul.mubr.bf16.vlgmr.msra.gmra.mrb[0].mxu1 %v5191_v16 }
  0x9f   :  { %1780 = vmatpush1.bf16.msra.mxu0 %v4366_v15  ;;  %1944 = vmatpush1.bf16.msra.mxu1 %v4369_v18  ;;  %v4458_v15 = vld [vmem:[#allocation3 + $0x3e4] ss:$16 sps:$4 sm:$0xff]   ;;  %v4456_v18 = vld [vmem:[#allocation3 + $0x3e0] ss:$16 sps:$4 sm:$0xff]  }
  0xa0   :  { %1781 = vmatprep.subr.bf16.mxu0 %v4374_v19  ;;  %1945 = vmatprep.subr.bf16.mxu1 %v4377_v20  ;;  %v4459_v19 = vld [vmem:[#allocation3 + $0x3e8] ss:$16 sps:$4 sm:$0xff]   ;;  %v4464_v20 = vld [vmem:[#allocation3 + $0x404] ss:$16 sps:$4 sm:$0xff]  }
  0xa1   :  { %1811 = vmatprep.mubr.bf16.mxu0 %v448_v23  ;;  %1975 = vmatprep.mubr.bf16.mxu1 %v448_v23  ;;  %v4467_v23 = vld [vmem:[#allocation3 + $0x40c] ss:$16 sps:$4 sm:$0xff]  }
  0xa3   :  { %1782 = vmatpush1.bf16.msra.mxu0 %v4372_v24  ;;  %1946 = vmatpush1.bf16.msra.mxu1 %v4375_v25  ;;  %v4462_v24 = vld [vmem:[#allocation3 + $0x400] ss:$16 sps:$4 sm:$0xff]   ;;  %v446_v25 = vcombine.high %v5191_v16, %v5191_v16 }
  0xa4   :  { %1783 = vmatprep.subr.bf16.mxu0 %v4380_v26  ;;  %1947 = vmatprep.subr.bf16.mxu1 %v4383_v27  ;;  %v4465_v26 = vld [vmem:[#allocation3 + $0x408] ss:$16 sps:$4 sm:$0xff]   ;;  %v4470_v27 = vld [vmem:[#allocation3 + $0x424] ss:$16 sps:$4 sm:$0xff]   ;;  %v4474_v16 = vld [vmem:[#allocation3 + $0x440] ss:$16 sps:$4 sm:$0xff]  }
  0xa7   :  { %1784 = vmatpush1.bf16.msra.mxu0 %v4378_v28  ;;  %1948 = vmatpush1.bf16.msra.mxu1 %v4381_v29  ;;  %v4473_v28 = vld [vmem:[#allocation3 + $0x42c] ss:$16 sps:$4 sm:$0xff]   ;;  %v4468_v29 = vld [vmem:[#allocation3 + $0x420] ss:$16 sps:$4 sm:$0xff]  }
  0xa8   :  { %1785 = vmatprep.subr.bf16.mxu0 %v4386_v30  ;;  %1949 = vmatprep.subr.bf16.mxu1 %v4389_v31  ;;  %v4471_v30 = vld [vmem:[#allocation3 + $0x428] ss:$16 sps:$4 sm:$0xff]   ;;  %v4476_v31 = vld [vmem:[#allocation3 + $0x444] ss:$16 sps:$4 sm:$0xff]  }
  0xab   :  { %1786 = vmatpush1.bf16.msra.mxu0 %v4384_v32  ;;  %1950 = vmatpush1.bf16.msra.mxu1 %v4387_v33  ;;  %v4479_v32 = vld [vmem:[#allocation3 + $0x44c] ss:$16 sps:$4 sm:$0xff]   ;;  %v4477_v33 = vld [vmem:[#allocation3 + $0x448] ss:$16 sps:$4 sm:$0xff]  }
  0xac   :  { %1787 = vmatprep.subr.bf16.mxu0 %v4392_v34  ;;  %1951 = vmatprep.subr.bf16.mxu1 %v4395_v35  ;;  %v4482_v34 = vld [vmem:[#allocation3 + $0x464] ss:$16 sps:$4 sm:$0xff]   ;;  %v4485_v35 = vld [vmem:[#allocation3 + $0x46c] ss:$16 sps:$4 sm:$0xff]  }
  0xaf   :  { %1788 = vmatpush1.bf16.msra.mxu0 %v4390_v36  ;;  %1952 = vmatpush1.bf16.msra.mxu1 %v4393_v37  ;;  %v4480_v36 = vld [vmem:[#allocation3 + $0x460] ss:$16 sps:$4 sm:$0xff]   ;;  %v4483_v37 = vld [vmem:[#allocation3 + $0x468] ss:$16 sps:$4 sm:$0xff]  }
  0xb0   :  { %1789 = vmatprep.subr.bf16.mxu0 %v4398_v38  ;;  %1953 = vmatprep.subr.bf16.mxu1 %v4401_v39  ;;  %v4488_v38 = vld [vmem:[#allocation3 + $0x484] ss:$16 sps:$4 sm:$0xff]   ;;  %v4491_v39 = vld [vmem:[#allocation3 + $0x48c] ss:$16 sps:$4 sm:$0xff]  }
  0xb3   :  { %1790 = vmatpush1.bf16.msra.mxu0 %v4396_v40  ;;  %1954 = vmatpush1.bf16.msra.mxu1 %v4399_v41  ;;  %v4486_v40 = vld [vmem:[#allocation3 + $0x480] ss:$16 sps:$4 sm:$0xff]   ;;  %v4489_v41 = vld [vmem:[#allocation3 + $0x488] ss:$16 sps:$4 sm:$0xff]  }
  0xb4   :  { %1791 = vmatprep.subr.bf16.mxu0 %v4404_v42  ;;  %1955 = vmatprep.subr.bf16.mxu1 %v4407_v44  ;;  %v4494_v42 = vld [vmem:[#allocation3 + $0x4a4] ss:$16 sps:$4 sm:$0xff]   ;;  %v4497_v44 = vld [vmem:[#allocation3 + $0x4ac] ss:$16 sps:$4 sm:$0xff]  }
  0xb7   :  { %1792 = vmatpush1.bf16.msra.mxu0 %v4402_v45  ;;  %1956 = vmatpush1.bf16.msra.mxu1 %v4405_v46  ;;  %v4492_v45 = vld [vmem:[#allocation3 + $0x4a0] ss:$16 sps:$4 sm:$0xff]   ;;  %v4495_v46 = vld [vmem:[#allocation3 + $0x4a8] ss:$16 sps:$4 sm:$0xff]  }
  0xb8   :  { %1793 = vmatprep.subr.bf16.mxu0 %v4410_v47  ;;  %1957 = vmatprep.subr.bf16.mxu1 %v4413_v48  ;;  %v4500_v47 = vld [vmem:[#allocation3 + $0x4c4] ss:$16 sps:$4 sm:$0xff]   ;;  %v4503_v48 = vld [vmem:[#allocation3 + $0x4cc] ss:$16 sps:$4 sm:$0xff]  }
  0xbb   :  { %1794 = vmatpush1.bf16.msra.mxu0 %v4408_v49  ;;  %1958 = vmatpush1.bf16.msra.mxu1 %v4411_v50  ;;  %v4498_v49 = vld [vmem:[#allocation3 + $0x4c0] ss:$16 sps:$4 sm:$0xff]   ;;  %v4501_v50 = vld [vmem:[#allocation3 + $0x4c8] ss:$16 sps:$4 sm:$0xff]  }
  0xbc   :  { %1795 = vmatprep.subr.bf16.mxu0 %v4416_v51  ;;  %1959 = vmatprep.subr.bf16.mxu1 %v4419_v52  ;;  %v4506_v51 = vld [vmem:[#allocation3 + $0x4e4] ss:$16 sps:$4 sm:$0xff]   ;;  %v4509_v52 = vld [vmem:[#allocation3 + $0x4ec] ss:$16 sps:$4 sm:$0xff]  }
  0xbf   :  { %1796 = vmatpush1.bf16.msra.mxu0 %v4414_v53  ;;  %1960 = vmatpush1.bf16.msra.mxu1 %v4417_v54  ;;  %v4504_v53 = vld [vmem:[#allocation3 + $0x4e0] ss:$16 sps:$4 sm:$0xff]   ;;  %v4507_v54 = vld [vmem:[#allocation3 + $0x4e8] ss:$16 sps:$4 sm:$0xff]  }
  0xc0   :  { %1797 = vmatprep.subr.bf16.mxu0 %v4422_v55  ;;  %1961 = vmatprep.subr.bf16.mxu1 %v4425_v56  ;;  %v4512_v55 = vld [vmem:[#allocation3 + $0x504] ss:$16 sps:$4 sm:$0xff]   ;;  %v4515_v56 = vld [vmem:[#allocation3 + $0x50c] ss:$16 sps:$4 sm:$0xff]  }
  0xc3   :  { %1798 = vmatpush1.bf16.msra.mxu0 %v4420_v57  ;;  %1962 = vmatpush1.bf16.msra.mxu1 %v4423_v58  ;;  %v4510_v57 = vld [vmem:[#allocation3 + $0x500] ss:$16 sps:$4 sm:$0xff]   ;;  %v4513_v58 = vld [vmem:[#allocation3 + $0x508] ss:$16 sps:$4 sm:$0xff]  }
  0xc4   :  { %1799 = vmatprep.subr.bf16.mxu0 %v4428_v59  ;;  %1963 = vmatprep.subr.bf16.mxu1 %v4431_v60  ;;  %v4518_v59 = vld [vmem:[#allocation3 + $0x524] ss:$16 sps:$4 sm:$0xff]   ;;  %v4521_v60 = vld [vmem:[#allocation3 + $0x52c] ss:$16 sps:$4 sm:$0xff]  }
  0xc7   :  { %1800 = vmatpush1.bf16.msra.mxu0 %v4426_v61  ;;  %1964 = vmatpush1.bf16.msra.mxu1 %v4429_v62  ;;  %v4516_v61 = vld [vmem:[#allocation3 + $0x520] ss:$16 sps:$4 sm:$0xff]   ;;  %v4519_v62 = vld [vmem:[#allocation3 + $0x528] ss:$16 sps:$4 sm:$0xff]  }
  0xc8   :  { %1801 = vmatprep.subr.bf16.mxu0 %v4434_v63  ;;  %1965 = vmatprep.subr.bf16.mxu1 %v4437_v0  ;;  %v4524_v63 = vld [vmem:[#allocation3 + $0x544] ss:$16 sps:$4 sm:$0xff]   ;;  %v4527_v0 = vld [vmem:[#allocation3 + $0x54c] ss:$16 sps:$4 sm:$0xff]  }
  0xcb   :  { %1802 = vmatpush1.bf16.msra.mxu0 %v4432_v1  ;;  %1966 = vmatpush1.bf16.msra.mxu1 %v4435_v2  ;;  %v4522_v1 = vld [vmem:[#allocation3 + $0x540] ss:$16 sps:$4 sm:$0xff]   ;;  %v4525_v2 = vld [vmem:[#allocation3 + $0x548] ss:$16 sps:$4 sm:$0xff]  }
  0xcc   :  { %1803 = vmatprep.subr.bf16.mxu0 %v4440_v3  ;;  %1967 = vmatprep.subr.bf16.mxu1 %v4443_v4  ;;  %v4530_v3 = vld [vmem:[#allocation3 + $0x564] ss:$16 sps:$4 sm:$0xff]   ;;  %v4533_v4 = vld [vmem:[#allocation3 + $0x56c] ss:$16 sps:$4 sm:$0xff]  }
  0xcf   :  { %1804 = vmatpush1.bf16.msra.mxu0 %v4438_v5  ;;  %1968 = vmatpush1.bf16.msra.mxu1 %v4441_v6  ;;  %v4528_v5 = vld [vmem:[#allocation3 + $0x560] ss:$16 sps:$4 sm:$0xff]   ;;  %v4531_v6 = vld [vmem:[#allocation3 + $0x568] ss:$16 sps:$4 sm:$0xff]  }
  0xd0   :  { %1805 = vmatprep.subr.bf16.mxu0 %v4446_v7  ;;  %1969 = vmatprep.subr.bf16.mxu1 %v4449_v8  ;;  %v4536_v7 = vld [vmem:[#allocation3 + $0x584] ss:$16 sps:$4 sm:$0xff]   ;;  %v4539_v8 = vld [vmem:[#allocation3 + $0x58c] ss:$16 sps:$4 sm:$0xff]  }
  0xd3   :  { %1806 = vmatpush1.bf16.msra.mxu0 %v4444_v9  ;;  %1970 = vmatpush1.bf16.msra.mxu1 %v4447_v10  ;;  %v4534_v9 = vld [vmem:[#allocation3 + $0x580] ss:$16 sps:$4 sm:$0xff]   ;;  %v4537_v10 = vld [vmem:[#allocation3 + $0x588] ss:$16 sps:$4 sm:$0xff]  }
  0xd4   :  { %1807 = vmatprep.subr.bf16.mxu0 %v4452_v11  ;;  %1971 = vmatprep.subr.bf16.mxu1 %v4455_v12  ;;  %v4542_v11 = vld [vmem:[#allocation3 + $0x5a4] ss:$16 sps:$4 sm:$0xff]   ;;  %v4545_v12 = vld [vmem:[#allocation3 + $0x5ac] ss:$16 sps:$4 sm:$0xff]  }
  0xd7   :  { %1808 = vmatpush1.bf16.msra.mxu0 %v4450_v13  ;;  %1972 = vmatpush1.bf16.msra.mxu1 %v4453_v14  ;;  %v4540_v13 = vld [vmem:[#allocation3 + $0x5a0] ss:$16 sps:$4 sm:$0xff]   ;;  %v4543_v14 = vld [vmem:[#allocation3 + $0x5a8] ss:$16 sps:$4 sm:$0xff]  }
  0xd8   :  { %1809 = vmatprep.subr.bf16.mxu0 %v4458_v15  ;;  %1973 = vmatprep.subr.bf16.mxu1 %v4461_v17  ;;  %v4548_v15 = vld [vmem:[#allocation3 + $0x5c4] ss:$16 sps:$4 sm:$0xff]   ;;  %v4551_v17 = vld [vmem:[#allocation3 + $0x5cc] ss:$16 sps:$4 sm:$0xff]  }
  0xdb   :  { %1810 = vmatpush1.bf16.msra.mxu0 %v4456_v18  ;;  %1974 = vmatpush1.bf16.msra.mxu1 %v4459_v19  ;;  %v4546_v18 = vld [vmem:[#allocation3 + $0x5c0] ss:$16 sps:$4 sm:$0xff]   ;;  %v4549_v19 = vld [vmem:[#allocation3 + $0x5c8] ss:$16 sps:$4 sm:$0xff]  }
  0xdc   :  { %1820 = vmatprep.subr.bf16.mxu0 %v4464_v20  ;;  %1984 = vmatprep.subr.bf16.mxu1 %v4467_v23  ;;  %v4554_v20 = vld [vmem:[#allocation3 + $0x5e4] ss:$16 sps:$4 sm:$0xff]   ;;  %v4557_v23 = vld [vmem:[#allocation3 + $0x5ec] ss:$16 sps:$4 sm:$0xff]  }
  0xde   :  { %1812 = vmatmul.mubr.bf16.vlgmr.msra.gmra.mrb[0].mxu0 %v446_v25  ;;  %1976 = vmatmul.mubr.bf16.vlgmr.msra.gmra.mrb[0].mxu1 %v446_v25  ;;  %v4555_v25 = vld [vmem:[#allocation3 + $0x5e8] ss:$16 sps:$4 sm:$0xff]  }
  0xdf   :  { %1821 = vmatpush1.bf16.msra.mxu0 %v4462_v24  ;;  %1985 = vmatpush1.bf16.msra.mxu1 %v4465_v26  ;;  %v4552_v24 = vld [vmem:[#allocation3 + $0x5e0] ss:$16 sps:$4 sm:$0xff]   ;;  %v4561_v26 = vld [vmem:[#allocation3 + $0x604] ss:$16 sps:$4 sm:$0xff]  }
  0xe0   :  { %1822 = vmatprep.subr.bf16.mxu0 %v4470_v27  ;;  %1986 = vmatprep.subr.bf16.mxu1 %v4473_v28  ;;  %v4564_v27 = vld [vmem:[#allocation3 + $0x60c] ss:$16 sps:$4 sm:$0xff]   ;;  %v4559_v28 = vld [vmem:[#allocation3 + $0x600] ss:$16 sps:$4 sm:$0xff]  }
  0xe1   :  { %1852 = vmatprep.mubr.bf16.mxu0 %v5194_v21  ;;  %2016 = vmatprep.mubr.bf16.mxu1 %v5194_v21 }
  0xe3   :  { %1823 = vmatpush1.bf16.msra.mxu0 %v4468_v29  ;;  %1987 = vmatpush1.bf16.msra.mxu1 %v4471_v30  ;;  %v4562_v29 = vld [vmem:[#allocation3 + $0x608] ss:$16 sps:$4 sm:$0xff]   ;;  %v4567_v30 = vld [vmem:[#allocation3 + $0x624] ss:$16 sps:$4 sm:$0xff]  }
  0xe4   :  { %1824 = vmatprep.subr.bf16.mxu0 %v4476_v31  ;;  %1988 = vmatprep.subr.bf16.mxu1 %v4479_v32  ;;  %v4570_v31 = vld [vmem:[#allocation3 + $0x62c] ss:$16 sps:$4 sm:$0xff]   ;;  %v4565_v32 = vld [vmem:[#allocation3 + $0x620] ss:$16 sps:$4 sm:$0xff]  }
  0xe7   :  { %1825 = vmatpush1.bf16.msra.mxu0 %v4474_v16  ;;  %1989 = vmatpush1.bf16.msra.mxu1 %v4477_v33  ;;  %v4568_v16 = vld [vmem:[#allocation3 + $0x628] ss:$16 sps:$4 sm:$0xff]   ;;  %v449_v33 = vcombine.high %v5194_v21, %v5194_v21  ;;  %v4577_v21 = vld [vmem:[#allocation3 + $0x660] ss:$16 sps:$4 sm:$0xff]  }
  0xe8   :  { %1826 = vmatprep.subr.bf16.mxu0 %v4482_v34  ;;  %1990 = vmatprep.subr.bf16.mxu1 %v4485_v35  ;;  %v4573_v34 = vld [vmem:[#allocation3 + $0x644] ss:$16 sps:$4 sm:$0xff]   ;;  %v4576_v35 = vld [vmem:[#allocation3 + $0x64c] ss:$16 sps:$4 sm:$0xff]  }
  0xeb   :  { %1827 = vmatpush1.bf16.msra.mxu0 %v4480_v36  ;;  %1991 = vmatpush1.bf16.msra.mxu1 %v4483_v37  ;;  %v4571_v36 = vld [vmem:[#allocation3 + $0x640] ss:$16 sps:$4 sm:$0xff]   ;;  %v4574_v37 = vld [vmem:[#allocation3 + $0x648] ss:$16 sps:$4 sm:$0xff]  }
  0xec   :  { %1828 = vmatprep.subr.bf16.mxu0 %v4488_v38  ;;  %1992 = vmatprep.subr.bf16.mxu1 %v4491_v39  ;;  %v4579_v38 = vld [vmem:[#allocation3 + $0x664] ss:$16 sps:$4 sm:$0xff]   ;;  %v4582_v39 = vld [vmem:[#allocation3 + $0x66c] ss:$16 sps:$4 sm:$0xff]  }
  0xef   :  { %1829 = vmatpush1.bf16.msra.mxu0 %v4486_v40  ;;  %1993 = vmatpush1.bf16.msra.mxu1 %v4489_v41  ;;  %v4580_v40 = vld [vmem:[#allocation3 + $0x668] ss:$16 sps:$4 sm:$0xff]   ;;  %v4585_v41 = vld [vmem:[#allocation3 + $0x684] ss:$16 sps:$4 sm:$0xff]  }
  0xf0   :  { %1830 = vmatprep.subr.bf16.mxu0 %v4494_v42  ;;  %1994 = vmatprep.subr.bf16.mxu1 %v4497_v44  ;;  %v4588_v42 = vld [vmem:[#allocation3 + $0x68c] ss:$16 sps:$4 sm:$0xff]   ;;  %v4583_v44 = vld [vmem:[#allocation3 + $0x680] ss:$16 sps:$4 sm:$0xff]  }
  0xf3   :  { %1831 = vmatpush1.bf16.msra.mxu0 %v4492_v45  ;;  %1995 = vmatpush1.bf16.msra.mxu1 %v4495_v46  ;;  %v4586_v45 = vld [vmem:[#allocation3 + $0x688] ss:$16 sps:$4 sm:$0xff]   ;;  %v4591_v46 = vld [vmem:[#allocation3 + $0x6a4] ss:$16 sps:$4 sm:$0xff]  }
  0xf4   :  { %1832 = vmatprep.subr.bf16.mxu0 %v4500_v47  ;;  %1996 = vmatprep.subr.bf16.mxu1 %v4503_v48  ;;  %v4594_v47 = vld [vmem:[#allocation3 + $0x6ac] ss:$16 sps:$4 sm:$0xff]   ;;  %v4589_v48 = vld [vmem:[#allocation3 + $0x6a0] ss:$16 sps:$4 sm:$0xff]  }
  0xf7   :  { %1833 = vmatpush1.bf16.msra.mxu0 %v4498_v49  ;;  %1997 = vmatpush1.bf16.msra.mxu1 %v4501_v50  ;;  %v4592_v49 = vld [vmem:[#allocation3 + $0x6a8] ss:$16 sps:$4 sm:$0xff]   ;;  %v4597_v50 = vld [vmem:[#allocation3 + $0x6c4] ss:$16 sps:$4 sm:$0xff]  }
  0xf8   :  { %1834 = vmatprep.subr.bf16.mxu0 %v4506_v51  ;;  %1998 = vmatprep.subr.bf16.mxu1 %v4509_v52  ;;  %v4600_v51 = vld [vmem:[#allocation3 + $0x6cc] ss:$16 sps:$4 sm:$0xff]   ;;  %v4595_v52 = vld [vmem:[#allocation3 + $0x6c0] ss:$16 sps:$4 sm:$0xff]  }
  0xfb   :  { %1835 = vmatpush1.bf16.msra.mxu0 %v4504_v53  ;;  %1999 = vmatpush1.bf16.msra.mxu1 %v4507_v54  ;;  %v4598_v53 = vld [vmem:[#allocation3 + $0x6c8] ss:$16 sps:$4 sm:$0xff]   ;;  %v4603_v54 = vld [vmem:[#allocation3 + $0x6e4] ss:$16 sps:$4 sm:$0xff]  }
  0xfc   :  { %1836 = vmatprep.subr.bf16.mxu0 %v4512_v55  ;;  %2000 = vmatprep.subr.bf16.mxu1 %v4515_v56  ;;  %v4606_v55 = vld [vmem:[#allocation3 + $0x6ec] ss:$16 sps:$4 sm:$0xff]   ;;  %v4601_v56 = vld [vmem:[#allocation3 + $0x6e0] ss:$16 sps:$4 sm:$0xff]  }
  0xff   :  { %1837 = vmatpush1.bf16.msra.mxu0 %v4510_v57  ;;  %2001 = vmatpush1.bf16.msra.mxu1 %v4513_v58  ;;  %v4604_v57 = vld [vmem:[#allocation3 + $0x6e8] ss:$16 sps:$4 sm:$0xff]   ;;  %v4609_v58 = vld [vmem:[#allocation3 + $0x704] ss:$16 sps:$4 sm:$0xff]  }
 0x100   :  { %1838 = vmatprep.subr.bf16.mxu0 %v4518_v59  ;;  %2002 = vmatprep.subr.bf16.mxu1 %v4521_v60  ;;  %v4612_v59 = vld [vmem:[#allocation3 + $0x70c] ss:$16 sps:$4 sm:$0xff]   ;;  %v4607_v60 = vld [vmem:[#allocation3 + $0x700] ss:$16 sps:$4 sm:$0xff]  }
 0x103   :  { %1839 = vmatpush1.bf16.msra.mxu0 %v4516_v61  ;;  %2003 = vmatpush1.bf16.msra.mxu1 %v4519_v62  ;;  %v4610_v61 = vld [vmem:[#allocation3 + $0x708] ss:$16 sps:$4 sm:$0xff]   ;;  %v4615_v62 = vld [vmem:[#allocation3 + $0x724] ss:$16 sps:$4 sm:$0xff]  }
 0x104   :  { %1840 = vmatprep.subr.bf16.mxu0 %v4524_v63  ;;  %2004 = vmatprep.subr.bf16.mxu1 %v4527_v0  ;;  %v4618_v63 = vld [vmem:[#allocation3 + $0x72c] ss:$16 sps:$4 sm:$0xff]   ;;  %v4613_v0 = vld [vmem:[#allocation3 + $0x720] ss:$16 sps:$4 sm:$0xff]  }
 0x107   :  { %1841 = vmatpush1.bf16.msra.mxu0 %v4522_v1  ;;  %2005 = vmatpush1.bf16.msra.mxu1 %v4525_v2  ;;  %v4616_v1 = vld [vmem:[#allocation3 + $0x728] ss:$16 sps:$4 sm:$0xff]   ;;  %v4621_v2 = vld [vmem:[#allocation3 + $0x744] ss:$16 sps:$4 sm:$0xff]  }
 0x108   :  { %1842 = vmatprep.subr.bf16.mxu0 %v4530_v3  ;;  %2006 = vmatprep.subr.bf16.mxu1 %v4533_v4  ;;  %v4624_v3 = vld [vmem:[#allocation3 + $0x74c] ss:$16 sps:$4 sm:$0xff]   ;;  %v4619_v4 = vld [vmem:[#allocation3 + $0x740] ss:$16 sps:$4 sm:$0xff]  }
 0x10b   :  { %1843 = vmatpush1.bf16.msra.mxu0 %v4528_v5  ;;  %2007 = vmatpush1.bf16.msra.mxu1 %v4531_v6  ;;  %v4622_v5 = vld [vmem:[#allocation3 + $0x748] ss:$16 sps:$4 sm:$0xff]   ;;  %v4627_v6 = vld [vmem:[#allocation3 + $0x764] ss:$16 sps:$4 sm:$0xff]  }
 0x10c   :  { %1844 = vmatprep.subr.bf16.mxu0 %v4536_v7  ;;  %2008 = vmatprep.subr.bf16.mxu1 %v4539_v8  ;;  %v4630_v7 = vld [vmem:[#allocation3 + $0x76c] ss:$16 sps:$4 sm:$0xff]   ;;  %v4625_v8 = vld [vmem:[#allocation3 + $0x760] ss:$16 sps:$4 sm:$0xff]  }
 0x10f   :  { %1845 = vmatpush1.bf16.msra.mxu0 %v4534_v9  ;;  %2009 = vmatpush1.bf16.msra.mxu1 %v4537_v10  ;;  %v4628_v9 = vld [vmem:[#allocation3 + $0x768] ss:$16 sps:$4 sm:$0xff]   ;;  %v4633_v10 = vld [vmem:[#allocation3 + $0x784] ss:$16 sps:$4 sm:$0xff]  }
 0x110   :  { %1846 = vmatprep.subr.bf16.mxu0 %v4542_v11  ;;  %2010 = vmatprep.subr.bf16.mxu1 %v4545_v12  ;;  %v4636_v11 = vld [vmem:[#allocation3 + $0x78c] ss:$16 sps:$4 sm:$0xff]   ;;  %v4631_v12 = vld [vmem:[#allocation3 + $0x780] ss:$16 sps:$4 sm:$0xff]  }
 0x113   :  { %1847 = vmatpush1.bf16.msra.mxu0 %v4540_v13  ;;  %2011 = vmatpush1.bf16.msra.mxu1 %v4543_v14  ;;  %v4634_v13 = vld [vmem:[#allocation3 + $0x788] ss:$16 sps:$4 sm:$0xff]   ;;  %v4639_v14 = vld [vmem:[#allocation3 + $0x7a4] ss:$16 sps:$4 sm:$0xff]  }
 0x114   :  { %1848 = vmatprep.subr.bf16.mxu0 %v4548_v15  ;;  %2012 = vmatprep.subr.bf16.mxu1 %v4551_v17  ;;  %v4642_v15 = vld [vmem:[#allocation3 + $0x7ac] ss:$16 sps:$4 sm:$0xff]   ;;  %v4637_v17 = vld [vmem:[#allocation3 + $0x7a0] ss:$16 sps:$4 sm:$0xff]  }
 0x117   :  { %1849 = vmatpush1.bf16.msra.mxu0 %v4546_v18  ;;  %2013 = vmatpush1.bf16.msra.mxu1 %v4549_v19  ;;  %v4640_v18 = vld [vmem:[#allocation3 + $0x7a8] ss:$16 sps:$4 sm:$0xff]   ;;  %v4645_v19 = vld [vmem:[#allocation3 + $0x7c4] ss:$16 sps:$4 sm:$0xff]  }
 0x118   :  { %1850 = vmatprep.subr.bf16.mxu0 %v4554_v20  ;;  %2014 = vmatprep.subr.bf16.mxu1 %v4557_v23  ;;  %v4648_v20 = vld [vmem:[#allocation3 + $0x7cc] ss:$16 sps:$4 sm:$0xff]   ;;  %v4643_v23 = vld [vmem:[#allocation3 + $0x7c0] ss:$16 sps:$4 sm:$0xff]  }
 0x11b   :  { %1851 = vmatpush1.bf16.msra.mxu0 %v4552_v24  ;;  %2015 = vmatpush1.bf16.msra.mxu1 %v4555_v25  ;;  %v4646_v24 = vld [vmem:[#allocation3 + $0x7c8] ss:$16 sps:$4 sm:$0xff]   ;;  %v4651_v25 = vld [vmem:[#allocation3 + $0x7e4] ss:$16 sps:$4 sm:$0xff]  }
 0x11c   :  { %1861 = vmatprep.subr.bf16.mxu0 %v4561_v26  ;;  %2025 = vmatprep.subr.bf16.mxu1 %v4564_v27  ;;  %v4654_v26 = vld [vmem:[#allocation3 + $0x7ec] ss:$16 sps:$4 sm:$0xff]   ;;  %v4649_v27 = vld [vmem:[#allocation3 + $0x7e0] ss:$16 sps:$4 sm:$0xff]  }
 0x11e   :  { %1853 = vmatmul.mubr.bf16.vlgmr.msra.gmra.mrb[0].mxu0 %v5197_v22  ;;  %2017 = vmatmul.mubr.bf16.vlgmr.msra.gmra.mrb[0].mxu1 %v5197_v22 }
 0x11f   :  { %1862 = vmatpush1.bf16.msra.mxu0 %v4559_v28  ;;  %2026 = vmatpush1.bf16.msra.mxu1 %v4562_v29  ;;  %v4652_v28 = vld [vmem:[#allocation3 + $0x7e8] ss:$16 sps:$4 sm:$0xff]   ;;  %v4657_v29 = vld [vmem:[#allocation5 + $0x4] ss:$8 sps:$4 sm:$0xff]  }
 0x120   :  { %1863 = vmatprep.subr.bf16.mxu0 %v4567_v30  ;;  %2027 = vmatprep.subr.bf16.mxu1 %v4570_v31  ;;  %v447_v30 = vcombine.high %v5197_v22, %v5197_v22  ;;  %v4655_v31 = vld [vmem:[#allocation5] ss:$8 sps:$4 sm:$0xff]  }
 0x121   :  { %1893 = vmatprep.mubr.bf16.mxu0 %v449_v33  ;;  %2057 = vmatprep.mubr.bf16.mxu1 %v449_v33  ;;  %v4663_v33 = vld [vmem:[#allocation5 + $0x24] ss:$8 sps:$4 sm:$0xff]   ;;  %v4667_v22 = vld [vmem:[#allocation5 + $0x40] ss:$8 sps:$4 sm:$0xff]  }
 0x123   :  { %1864 = vmatpush1.bf16.msra.mxu0 %v4565_v32  ;;  %2028 = vmatpush1.bf16.msra.mxu1 %v4568_v16  ;;  %v4660_v32 = vld [vmem:[#allocation5 + $0x14] ss:$8 sps:$4 sm:$0xff]   ;;  %v4658_v16 = vld [vmem:[#allocation5 + $0x10] ss:$8 sps:$4 sm:$0xff]  }
 0x124   :  { %1865 = vmatprep.subr.bf16.mxu0 %v4573_v34  ;;  %2029 = vmatprep.subr.bf16.mxu1 %v4576_v35  ;;  %v4661_v34 = vld [vmem:[#allocation5 + $0x20] ss:$8 sps:$4 sm:$0xff]   ;;  %v4666_v35 = vld [vmem:[#allocation5 + $0x34] ss:$8 sps:$4 sm:$0xff]  }
 0x127   :  { %1866 = vmatpush1.bf16.msra.mxu0 %v4571_v36  ;;  %2030 = vmatpush1.bf16.msra.mxu1 %v4574_v37  ;;  %v4664_v36 = vld [vmem:[#allocation5 + $0x30] ss:$8 sps:$4 sm:$0xff]   ;;  %v4669_v37 = vld [vmem:[#allocation5 + $0x44] ss:$8 sps:$4 sm:$0xff]  }
 0x128   :  { %1867 = vmatprep.subr.bf16.mxu0 %v4579_v38  ;;  %2031 = vmatprep.subr.bf16.mxu1 %v4582_v39  ;;  %v4672_v38 = vld [vmem:[#allocation5 + $0x54] ss:$8 sps:$4 sm:$0xff]   ;;  %v4670_v39 = vld [vmem:[#allocation5 + $0x50] ss:$8 sps:$4 sm:$0xff]  }
 0x12b   :  { %1868 = vmatpush1.bf16.msra.mxu0 %v4577_v21  ;;  %2032 = vmatpush1.bf16.msra.mxu1 %v4580_v40  ;;  %v4675_v21 = vld [vmem:[#allocation5 + $0x64] ss:$8 sps:$4 sm:$0xff]   ;;  %v4673_v40 = vld [vmem:[#allocation5 + $0x60] ss:$8 sps:$4 sm:$0xff]  }
 0x12c   :  { %1869 = vmatprep.subr.bf16.mxu0 %v4585_v41  ;;  %2033 = vmatprep.subr.bf16.mxu1 %v4588_v42  ;;  %v4678_v41 = vld [vmem:[#allocation5 + $0x74] ss:$8 sps:$4 sm:$0xff]   ;;  %v4676_v42 = vld [vmem:[#allocation5 + $0x70] ss:$8 sps:$4 sm:$0xff]  }
 0x12f   :  { %1870 = vmatpush1.bf16.msra.mxu0 %v4583_v44  ;;  %2034 = vmatpush1.bf16.msra.mxu1 %v4586_v45  ;;  %v4681_v44 = vld [vmem:[#allocation5 + $0x84] ss:$8 sps:$4 sm:$0xff]   ;;  %v4679_v45 = vld [vmem:[#allocation5 + $0x80] ss:$8 sps:$4 sm:$0xff]  }
 0x130   :  { %1871 = vmatprep.subr.bf16.mxu0 %v4591_v46  ;;  %2035 = vmatprep.subr.bf16.mxu1 %v4594_v47  ;;  %v4684_v46 = vld [vmem:[#allocation5 + $0x94] ss:$8 sps:$4 sm:$0xff]   ;;  %v4682_v47 = vld [vmem:[#allocation5 + $0x90] ss:$8 sps:$4 sm:$0xff]  }
 0x133   :  { %1872 = vmatpush1.bf16.msra.mxu0 %v4589_v48  ;;  %2036 = vmatpush1.bf16.msra.mxu1 %v4592_v49  ;;  %v4687_v48 = vld [vmem:[#allocation5 + $0xa4] ss:$8 sps:$4 sm:$0xff]   ;;  %v4685_v49 = vld [vmem:[#allocation5 + $0xa0] ss:$8 sps:$4 sm:$0xff]  }
 0x134   :  { %1873 = vmatprep.subr.bf16.mxu0 %v4597_v50  ;;  %2037 = vmatprep.subr.bf16.mxu1 %v4600_v51  ;;  %v4690_v50 = vld [vmem:[#allocation5 + $0xb4] ss:$8 sps:$4 sm:$0xff]   ;;  %v4688_v51 = vld [vmem:[#allocation5 + $0xb0] ss:$8 sps:$4 sm:$0xff]  }
 0x137   :  { %1874 = vmatpush1.bf16.msra.mxu0 %v4595_v52  ;;  %2038 = vmatpush1.bf16.msra.mxu1 %v4598_v53  ;;  %v4693_v52 = vld [vmem:[#allocation5 + $0xc4] ss:$8 sps:$4 sm:$0xff]   ;;  %v4691_v53 = vld [vmem:[#allocation5 + $0xc0] ss:$8 sps:$4 sm:$0xff]  }
 0x138   :  { %1875 = vmatprep.subr.bf16.mxu0 %v4603_v54  ;;  %2039 = vmatprep.subr.bf16.mxu1 %v4606_v55  ;;  %v4696_v54 = vld [vmem:[#allocation5 + $0xd4] ss:$8 sps:$4 sm:$0xff]   ;;  %v4694_v55 = vld [vmem:[#allocation5 + $0xd0] ss:$8 sps:$4 sm:$0xff]  }
 0x13b   :  { %1876 = vmatpush1.bf16.msra.mxu0 %v4601_v56  ;;  %2040 = vmatpush1.bf16.msra.mxu1 %v4604_v57  ;;  %v4699_v56 = vld [vmem:[#allocation5 + $0xe4] ss:$8 sps:$4 sm:$0xff]   ;;  %v4697_v57 = vld [vmem:[#allocation5 + $0xe0] ss:$8 sps:$4 sm:$0xff]  }
 0x13c   :  { %1877 = vmatprep.subr.bf16.mxu0 %v4609_v58  ;;  %2041 = vmatprep.subr.bf16.mxu1 %v4612_v59  ;;  %v4702_v58 = vld [vmem:[#allocation5 + $0xf4] ss:$8 sps:$4 sm:$0xff]   ;;  %v4700_v59 = vld [vmem:[#allocation5 + $0xf0] ss:$8 sps:$4 sm:$0xff]  }
 0x13f   :  { %1878 = vmatpush1.bf16.msra.mxu0 %v4607_v60  ;;  %2042 = vmatpush1.bf16.msra.mxu1 %v4610_v61  ;;  %v4705_v60 = vld [vmem:[#allocation5 + $0x104] ss:$8 sps:$4 sm:$0xff]  }
 0x140   :  { %1879 = vmatprep.subr.bf16.mxu0 %v4615_v62  ;;  %2043 = vmatprep.subr.bf16.mxu1 %v4618_v63  ;;  %v4751_v61 = vld [vmem:[#allocation7 + $0x40] sm:$0xff]   ;;  %v4753_v63 = vld [vmem:[#allocation7 + $0x48] sm:$0xff]  }
 0x141   :  { %v4752_v62 = vld [vmem:[#allocation7] sm:$0xff]  }
 0x143   :  { %1880 = vmatpush1.bf16.msra.mxu0 %v4613_v0  ;;  %2044 = vmatpush1.bf16.msra.mxu1 %v4616_v1  ;;  %v4754_v0 = vld [vmem:[#allocation7 + $0x8] sm:$0xff]   ;;  %v4755_v1 = vld [vmem:[#allocation7 + $0x50] sm:$0xff]  }
 0x144   :  { %1881 = vmatprep.subr.bf16.mxu0 %v4621_v2  ;;  %2045 = vmatprep.subr.bf16.mxu1 %v4624_v3  ;;  %v4756_v2 = vld [vmem:[#allocation7 + $0x10] sm:$0xff]   ;;  %v4757_v3 = vld [vmem:[#allocation7 + $0x58] sm:$0xff]  }
 0x147   :  { %1882 = vmatpush1.bf16.msra.mxu0 %v4619_v4  ;;  %2046 = vmatpush1.bf16.msra.mxu1 %v4622_v5  ;;  %v4758_v4 = vld [vmem:[#allocation7 + $0x18] sm:$0xff]   ;;  %v4759_v5 = vld [vmem:[#allocation7 + $0x60] sm:$0xff]  }
 0x148   :  { %1883 = vmatprep.subr.bf16.mxu0 %v4627_v6  ;;  %2047 = vmatprep.subr.bf16.mxu1 %v4630_v7  ;;  %v4760_v6 = vld [vmem:[#allocation7 + $0x20] sm:$0xff]   ;;  %v4761_v7 = vld [vmem:[#allocation7 + $0x68] sm:$0xff]  }
 0x14b   :  { %1884 = vmatpush1.bf16.msra.mxu0 %v4625_v8  ;;  %2048 = vmatpush1.bf16.msra.mxu1 %v4628_v9  ;;  %v4762_v8 = vld [vmem:[#allocation7 + $0x28] sm:$0xff]   ;;  %v5212_v9 = vsub.s32 0, %v5179_v43 }
 0x14c   :  { %1885 = vmatprep.subr.bf16.mxu0 %v4633_v10  ;;  %2049 = vmatprep.subr.bf16.mxu1 %v4636_v11  ;;  %v5217_v10 = vld [vmem:[%s5380_s3] sm:$0xf]  ;;  %v5220_v11 = vsub.s32 1, %v5179_v43 }
 0x14f   :  { %1886 = vmatpush1.bf16.msra.mxu0 %v4631_v12  ;;  %2050 = vmatpush1.bf16.msra.mxu1 %v4634_v13  ;;  %v5223_v12 = vsub.s32 3, %v5179_v43  ;;  %v383_v13 = vrot.slane %v5217_v10, %v5212_v9 }
 0x150   :  { %1887 = vmatprep.subr.bf16.mxu0 %v4639_v14  ;;  %2051 = vmatprep.subr.bf16.mxu1 %v4642_v15  ;;  %v387_v14 = vrot.slane %v5217_v10, %v5220_v11 }
 0x151   :  { %v395_v15 = vrot.slane %v5217_v10, %v5223_v12 }
 0x153   :  { %1888 = vmatpush1.bf16.msra.mxu0 %v4637_v17  ;;  %2052 = vmatpush1.bf16.msra.mxu1 %v4640_v18 }
 0x154   :  { %1889 = vmatprep.subr.bf16.mxu0 %v4645_v19  ;;  %2053 = vmatprep.subr.bf16.mxu1 %v4648_v20 }
 0x157   :  { %1890 = vmatpush1.bf16.msra.mxu0 %v4643_v23  ;;  %2054 = vmatpush1.bf16.msra.mxu1 %v4646_v24 }
 0x158   :  { %1891 = vmatprep.subr.bf16.mxu0 %v4651_v25  ;;  %2055 = vmatprep.subr.bf16.mxu1 %v4654_v26 }
 0x15b   :  { %1892 = vmatpush1.bf16.msra.mxu0 %v4649_v27  ;;  %2056 = vmatpush1.bf16.msra.mxu1 %v4652_v28 }
 0x15c   :  { %2478 = vmatprep.subr.bf16.mxu0 %v4657_v29  ;;  %4157 = vmatprep.subr.bf16.mxu1 %v4751_v61  ;;  %v5234_v61 = vsub.s32 2, %v5179_v43  ;;  %v4748_v43 = vld [vmem:[#allocation5 + $0x1f0] ss:$8 sps:$4 sm:$0xff]  }
 0x15e   :  { %1894 = vmatmul.mubr.bf16.vlgmr.msra.gmra.mrb[0].mxu0 %v447_v30  ;;  %2058 = vmatmul.mubr.bf16.vlgmr.msra.gmra.mrb[0].mxu1 %v447_v30 }
 0x15f   :  { %2479 = vmatpush1.bf16.msra.mxu0 %v4655_v31  ;;  %4158 = vmatpush3.bf16.msra.mxu1 %v4752_v62  ;;  %v4739_v62 = vld [vmem:[#allocation5 + $0x1c0] ss:$8 sps:$4 sm:$0xff]  }
 0x160   :  { %2480 = vmatprep.subr.bf16.mxu0 %v4660_v32  ;;  %4159 = vmatprep.subr.bf16.mxu1 %v4753_v63  ;;  %v4744_v63 = vld [vmem:[#allocation5 + $0x1d4] ss:$8 sps:$4 sm:$0xff]  }
 0x163   :  { %2481 = vmatpush1.bf16.msra.mxu0 %v4658_v16  ;;  %4160 = vmatpush3.bf16.msra.mxu1 %v4754_v0  ;;  %v391_v0 = vrot.slane %v5217_v10, %v5234_v61  ;;  %v4763_v10 = vld [vmem:[#allocation7 + $0x70] sm:$0xff]  }
 0x164   :  { %2482 = vmatprep.subr.bf16.mxu0 %v4663_v33  ;;  %4161 = vmatprep.subr.bf16.mxu1 %v4755_v1  ;;  %v4742_v1 = vld [vmem:[#allocation5 + $0x1d0] ss:$8 sps:$4 sm:$0xff]  }
 0x167   :  { %2483 = vmatpush1.bf16.msra.mxu0 %v4661_v34  ;;  %4162 = vmatpush3.bf16.msra.mxu1 %v4756_v2  ;;  %v4747_v2 = vld [vmem:[#allocation5 + $0x1e4] ss:$8 sps:$4 sm:$0xff]  }
 0x168   :  { %2484 = vmatprep.subr.bf16.mxu0 %v4666_v35  ;;  %4163 = vmatprep.subr.bf16.mxu1 %v4757_v3 }
 0x16b   :  { %2485 = vmatpush1.bf16.msra.mxu0 %v4664_v36  ;;  %4164 = vmatpush3.bf16.msra.mxu1 %v4758_v4  ;;  %v4703_v36 = vld [vmem:[#allocation5 + $0x100] ss:$8 sps:$4 sm:$0xff]  }
 0x16c   :  { %2486 = vmatprep.subr.bf16.mxu0 %v4669_v37  ;;  %4165 = vmatprep.subr.bf16.mxu1 %v4759_v5  ;;  %v4745_v4 = vld [vmem:[#allocation5 + $0x1e0] ss:$8 sps:$4 sm:$0xff]   ;;  %v4750_v5 = vld [vmem:[#allocation5 + $0x1f4] ss:$8 sps:$4 sm:$0xff]  }
 0x16f   :  { %2487 = vmatpush1.bf16.msra.mxu0 %v4667_v22  ;;  %4166 = vmatpush3.bf16.msra.mxu1 %v4760_v6  ;;  %v4708_v22 = vld [vmem:[#allocation5 + $0x114] ss:$8 sps:$4 sm:$0xff]  }
 0x170   :  { %2488 = vmatprep.subr.bf16.mxu0 %v4672_v38  ;;  %4167 = vmatprep.subr.bf16.mxu1 %v4761_v7 }
 0x173   :  { %2489 = vmatpush1.bf16.msra.mxu0 %v4670_v39  ;;  %4168 = vmatpush3.bf16.msra.mxu1 %v4762_v8  ;;  %v4706_v39 = vld [vmem:[#allocation5 + $0x110] ss:$8 sps:$4 sm:$0xff]  }
 0x174   :  { %2490 = vmatprep.subr.bf16.mxu0 %v4675_v21  ;;  %v4711_v21 = vld [vmem:[#allocation5 + $0x124] ss:$8 sps:$4 sm:$0xff]   ;;  %4169 = vmatprep.subr.bf16.mxu1 %v4763_v10  ;;  %v4822_v10 = vld [vmem:[#allocation8 + $0x18] sm:$0xff]  }
 0x177   :  { %2491 = vmatpush1.bf16.msra.mxu0 %v4673_v40  ;;  %v4709_v40 = vld [vmem:[#allocation5 + $0x120] ss:$8 sps:$4 sm:$0xff]  }
 0x178   :  { %2492 = vmatprep.subr.bf16.mxu0 %v4678_v41  ;;  %v4714_v41 = vld [vmem:[#allocation5 + $0x134] ss:$8 sps:$4 sm:$0xff]  }
 0x17b   :  { %2493 = vmatpush1.bf16.msra.mxu0 %v4676_v42  ;;  %v4712_v42 = vld [vmem:[#allocation5 + $0x130] ss:$8 sps:$4 sm:$0xff]  }
 0x17c   :  { %2494 = vmatprep.subr.bf16.mxu0 %v4681_v44  ;;  %v4717_v44 = vld [vmem:[#allocation5 + $0x144] ss:$8 sps:$4 sm:$0xff]  }
 0x17f   :  { %2495 = vmatpush1.bf16.msra.mxu0 %v4679_v45  ;;  %v4715_v45 = vld [vmem:[#allocation5 + $0x140] ss:$8 sps:$4 sm:$0xff]  }
 0x180   :  { %2496 = vmatprep.subr.bf16.mxu0 %v4684_v46  ;;  %v4720_v46 = vld [vmem:[#allocation5 + $0x154] ss:$8 sps:$4 sm:$0xff]  }
 0x183   :  { %2497 = vmatpush1.bf16.msra.mxu0 %v4682_v47  ;;  %v4718_v47 = vld [vmem:[#allocation5 + $0x150] ss:$8 sps:$4 sm:$0xff]  }
 0x184   :  { %2498 = vmatprep.subr.bf16.mxu0 %v4687_v48  ;;  %v4723_v48 = vld [vmem:[#allocation5 + $0x164] ss:$8 sps:$4 sm:$0xff]  }
 0x187   :  { %2499 = vmatpush1.bf16.msra.mxu0 %v4685_v49  ;;  %v4721_v49 = vld [vmem:[#allocation5 + $0x160] ss:$8 sps:$4 sm:$0xff]  }
 0x188   :  { %2500 = vmatprep.subr.bf16.mxu0 %v4690_v50  ;;  %v4726_v50 = vld [vmem:[#allocation5 + $0x174] ss:$8 sps:$4 sm:$0xff]  }
 0x18b   :  { %2501 = vmatpush1.bf16.msra.mxu0 %v4688_v51  ;;  %v4724_v51 = vld [vmem:[#allocation5 + $0x170] ss:$8 sps:$4 sm:$0xff]  }
 0x18c   :  { %2502 = vmatprep.subr.bf16.mxu0 %v4693_v52  ;;  %v4729_v52 = vld [vmem:[#allocation5 + $0x184] ss:$8 sps:$4 sm:$0xff]  }
 0x18f   :  { %2503 = vmatpush1.bf16.msra.mxu0 %v4691_v53  ;;  %v4727_v53 = vld [vmem:[#allocation5 + $0x180] ss:$8 sps:$4 sm:$0xff]  }
 0x190   :  { %2504 = vmatprep.subr.bf16.mxu0 %v4696_v54  ;;  %v4732_v54 = vld [vmem:[#allocation5 + $0x194] ss:$8 sps:$4 sm:$0xff]  }
 0x193   :  { %2505 = vmatpush1.bf16.msra.mxu0 %v4694_v55  ;;  %v4730_v55 = vld [vmem:[#allocation5 + $0x190] ss:$8 sps:$4 sm:$0xff]  }
 0x194   :  { %2506 = vmatprep.subr.bf16.mxu0 %v4699_v56  ;;  %v4735_v56 = vld [vmem:[#allocation5 + $0x1a4] ss:$8 sps:$4 sm:$0xff]  }
 0x197   :  { %2507 = vmatpush1.bf16.msra.mxu0 %v4697_v57  ;;  %v4733_v57 = vld [vmem:[#allocation5 + $0x1a0] ss:$8 sps:$4 sm:$0xff]  }
 0x198   :  { %2508 = vmatprep.subr.bf16.mxu0 %v4702_v58  ;;  %v4738_v58 = vld [vmem:[#allocation5 + $0x1b4] ss:$8 sps:$4 sm:$0xff]  }
 0x19b   :  { %2509 = vmatpush1.bf16.msra.mxu0 %v4700_v59  ;;  %v4736_v59 = vld [vmem:[#allocation5 + $0x1b0] ss:$8 sps:$4 sm:$0xff]  }
 0x19c   :  { %2519 = vmatprep.subr.bf16.mxu0 %v4705_v60  ;;  %v4741_v60 = vld [vmem:[#allocation5 + $0x1c4] ss:$8 sps:$4 sm:$0xff]  }
 0x231   :  { %v1895_v17 = vpop.f32.mrb[0].mxu0  ;;  %v5231_v18 = vpop.f32.mrb[0].mxu1 }
 0x232   :  { %v4223_v19 = vadd.f32 %v1895_v17, %v383_v13  ;;  %v1897_v20 = vpop.f32.mrb[1].mxu0  ;;  %v2061_v23 = vpop.f32.mrb[1].mxu1  ;;  %v4225_v3 = vadd.f32 %v5231_v18, %v391_v0  ;;  %v4764_v13 = vld [vmem:[#allocation7 + $0x30] sm:$0xff]   ;;  %v2146_v18 = vld [vmem:[%s5382_s5] sm:$0x3] }
 0x233   :  { %v4224_v24 = vadd.f32 %v1897_v20, %v387_v14  ;;  %v4226_v25 = vadd.f32 %v2061_v23, %v395_v15  ;;  %v1899_v26 = vpop.f32.mrb[2].mxu0  ;;  %v2063_v27 = vpop.f32.mrb[2].mxu1  ;;  %4170 = vmatpush3.bf16.msra.mxu1 %v4764_v13  ;;  %v4765_v14 = vld [vmem:[#allocation7 + $0x78] sm:$0xff]   ;;  %v4769_v17 = vld [vmem:[%s5385_s8 + $0x4] ss:$16 sps:$4 sm:$0xff]   ;;  %v2155_v20 = vrot.slane %v2146_v18, %v5220_v11 }
 0x234   :  { %vm2066_vm0 = vcmp.ge.f32.partialorder %v4223_v19, 0.0  ;;  %v2070_v28 = vmul.f32 0.2, %v4223_v19  ;;  %v1900_v32 = vpop.f32.mrb[3].mxu0  ;;  %v2064_v16 = vpop.f32.mrb[3].mxu1  ;;  %vm2068_vm3 = vcmp.ge.f32.partialorder %v4225_v3, 0.0  ;;  %4171 = vmatprep.subr.bf16.mxu1 %v4765_v14 }
 0x235   :  { %vm2067_vm1 = vcmp.ge.f32.partialorder %v4224_v24, 0.0  ;;  %v2071_v29 = vmul.f32 0.2, %v4224_v24  ;;  %vm2069_vm2 = vcmp.ge.f32.partialorder %v4226_v25, 0.0  ;;  %v2073_v30 = vmul.f32 0.2, %v4226_v25 }
 0x236   :  { %v2074_v31 = vsel %vm2066_vm0, %v4223_v19, %v2070_v28  ;;  %v2072_v6 = vmul.f32 0.2, %v4225_v3  ;;  %v4766_v15 = vld [vmem:[#allocation7 + $0x38] sm:$0xff]   ;;  %v2151_v19 = vrot.slane %v2146_v18, %v5212_v9  ;;  %v4823_v13 = vld [vmem:[#allocation8 + $0x60] sm:$0xff]   ;;  %v4827_v18 = vld [vmem:[#allocation8 + $0x70] sm:$0xff]  }
 0x237   :  { %v2075_v33 = vsel %vm2067_vm1, %v4224_v24, %v2071_v29  ;;  %v2077_v34 = vsel %vm2069_vm2, %v4226_v25, %v2073_v30  ;;  %v2078_v37 = vpack.c.bf16 %v2074_v31, %v2074_v31  ;;  %4172 = vmatpush3.bf16.msra.mxu1 %v4766_v15  ;;  %v4809_v0 = vld [vmem:[%s5385_s8 + $0xc8] ss:$16 sps:$4 sm:$0xff]  }
 0x238   :  { %v2079_v35 = vpack.c.bf16 %v2075_v33, %v2075_v33  ;;  %v2081_v38 = vpack.c.bf16 %v2077_v34, %v2077_v34  ;;  %v2076_v7 = vsel %vm2068_vm3, %v4225_v3, %v2072_v6  ;;  %2939 = vmatprep.subr.bf16.mxu1 %v4769_v17  ;;  %v4767_v33 = vld [vmem:[%s5385_s8] ss:$16 sps:$4 sm:$0xff]  }
 0x239   :  { %v2080_v8 = vpack.c.bf16 %v2076_v7, %v2076_v7  ;;  %v4815_v3 = vld [vmem:[#allocation8 + $0x40] sm:$0xff]   ;;  %v4818_v6 = vld [vmem:[#allocation8 + $0x8] sm:$0xff]   ;;  %v4820_v7 = vld [vmem:[#allocation8 + $0x10] sm:$0xff]  }
 0x23a   :  { %2510 = vmatprep.mubr.bf16.mxu0 %v2079_v35  ;;  %v4772_v35 = vld [vmem:[%s5385_s8 + $0x24] ss:$16 sps:$4 sm:$0xff]   ;;  %v4825_v15 = vld [vmem:[#allocation8 + $0x68] sm:$0xff]  }
 0x23b   :  { %2511 = vmatmul.mubr.bf16.vlgmr.msra.gmra.mrb[4].mxu0 %v2078_v37  ;;  %v5023_v37 = vmov 0   ;;  %v4824_v14 = vld [vmem:[#allocation8 + $0x20] sm:$0xff]   ;;  %v4826_v17 = vld [vmem:[#allocation8 + $0x28] sm:$0xff]  }
 0x23c   :  { %2520 = vmatpush1.bf16.msra.mxu0 %v4703_v36  ;;  %2551 = vmatprep.mubr.bf16.mxu0 %v2081_v38  ;;  %v4770_v36 = vld [vmem:[%s5385_s8 + $0x20] ss:$16 sps:$4 sm:$0xff]  }
 0x23d   :  { %2521 = vmatprep.subr.bf16.mxu0 %v4708_v22  ;;  %v4775_v22 = vld [vmem:[%s5385_s8 + $0x44] ss:$16 sps:$4 sm:$0xff]   ;;  %v4773_v38 = vld [vmem:[%s5385_s8 + $0x40] ss:$16 sps:$4 sm:$0xff]  }
 0x240   :  { %2522 = vmatpush1.bf16.msra.mxu0 %v4706_v39  ;;  %v4778_v39 = vld [vmem:[%s5385_s8 + $0x64] ss:$16 sps:$4 sm:$0xff]  }
 0x241   :  { %2523 = vmatprep.subr.bf16.mxu0 %v4711_v21  ;;  %v4776_v21 = vld [vmem:[%s5385_s8 + $0x60] ss:$16 sps:$4 sm:$0xff]  }
 0x244   :  { %2524 = vmatpush1.bf16.msra.mxu0 %v4709_v40  ;;  %v4781_v40 = vld [vmem:[%s5385_s8 + $0x84] ss:$16 sps:$4 sm:$0xff]  }
 0x245   :  { %2525 = vmatprep.subr.bf16.mxu0 %v4714_v41  ;;  %v4779_v41 = vld [vmem:[%s5385_s8 + $0x80] ss:$16 sps:$4 sm:$0xff]  }
 0x248   :  { %2526 = vmatpush1.bf16.msra.mxu0 %v4712_v42  ;;  %v4784_v42 = vld [vmem:[%s5385_s8 + $0xa4] ss:$16 sps:$4 sm:$0xff]  }
 0x249   :  { %2527 = vmatprep.subr.bf16.mxu0 %v4717_v44  ;;  %v4782_v44 = vld [vmem:[%s5385_s8 + $0xa0] ss:$16 sps:$4 sm:$0xff]  }
 0x24c   :  { %2528 = vmatpush1.bf16.msra.mxu0 %v4715_v45  ;;  %v4787_v45 = vld [vmem:[%s5385_s8 + $0xc4] ss:$16 sps:$4 sm:$0xff]  }
 0x24d   :  { %2529 = vmatprep.subr.bf16.mxu0 %v4720_v46  ;;  %v4785_v46 = vld [vmem:[%s5385_s8 + $0xc0] ss:$16 sps:$4 sm:$0xff]  }
 0x250   :  { %2530 = vmatpush1.bf16.msra.mxu0 %v4718_v47  ;;  %v4790_v47 = vld [vmem:[%s5385_s8 + $0xe4] ss:$16 sps:$4 sm:$0xff]  }
 0x251   :  { %2531 = vmatprep.subr.bf16.mxu0 %v4723_v48  ;;  %v4788_v48 = vld [vmem:[%s5385_s8 + $0xe0] ss:$16 sps:$4 sm:$0xff]  }
 0x254   :  { %2532 = vmatpush1.bf16.msra.mxu0 %v4721_v49  ;;  %v4793_v49 = vld [vmem:[%s5385_s8 + $0xc] ss:$16 sps:$4 sm:$0xff]  }
 0x255   :  { %2533 = vmatprep.subr.bf16.mxu0 %v4726_v50  ;;  %v2746_v50 = vld [vmem:[%s5378_s1] sm:$0x1] }
 0x258   :  { %2534 = vmatpush1.bf16.msra.mxu0 %v4724_v51  ;;  %v4791_v51 = vld [vmem:[%s5385_s8 + $0x8] ss:$16 sps:$4 sm:$0xff]  }
 0x259   :  { %2535 = vmatprep.subr.bf16.mxu0 %v4729_v52  ;;  %v4796_v52 = vld [vmem:[%s5385_s8 + $0x2c] ss:$16 sps:$4 sm:$0xff]  }
 0x25c   :  { %2536 = vmatpush1.bf16.msra.mxu0 %v4727_v53  ;;  %v4794_v53 = vld [vmem:[%s5385_s8 + $0x28] ss:$16 sps:$4 sm:$0xff]  }
 0x25d   :  { %2537 = vmatprep.subr.bf16.mxu0 %v4732_v54  ;;  %v4799_v54 = vld [vmem:[%s5385_s8 + $0x4c] ss:$16 sps:$4 sm:$0xff]  }
 0x260   :  { %2538 = vmatpush1.bf16.msra.mxu0 %v4730_v55  ;;  %v4797_v55 = vld [vmem:[%s5385_s8 + $0x48] ss:$16 sps:$4 sm:$0xff]  }
 0x261   :  { %2539 = vmatprep.subr.bf16.mxu0 %v4735_v56  ;;  %v4802_v56 = vld [vmem:[%s5385_s8 + $0x6c] ss:$16 sps:$4 sm:$0xff]  }
 0x264   :  { %2540 = vmatpush1.bf16.msra.mxu0 %v4733_v57  ;;  %v4800_v57 = vld [vmem:[%s5385_s8 + $0x68] ss:$16 sps:$4 sm:$0xff]  }
 0x265   :  { %2541 = vmatprep.subr.bf16.mxu0 %v4738_v58  ;;  %v4805_v58 = vld [vmem:[%s5385_s8 + $0x8c] ss:$16 sps:$4 sm:$0xff]  }
 0x268   :  { %2542 = vmatpush1.bf16.msra.mxu0 %v4736_v59  ;;  %v4803_v59 = vld [vmem:[%s5385_s8 + $0x88] ss:$16 sps:$4 sm:$0xff]  }
 0x269   :  { %2543 = vmatprep.subr.bf16.mxu0 %v4741_v60  ;;  %v4808_v60 = vld [vmem:[%s5385_s8 + $0xac] ss:$16 sps:$4 sm:$0xff]  }
 0x26c   :  { %2544 = vmatpush1.bf16.msra.mxu0 %v4739_v62  ;;  %v4806_v62 = vld [vmem:[%s5385_s8 + $0xa8] ss:$16 sps:$4 sm:$0xff]  }
 0x26d   :  { %2545 = vmatprep.subr.bf16.mxu0 %v4744_v63  ;;  %v4811_v63 = vld [vmem:[%s5385_s8 + $0xcc] ss:$16 sps:$4 sm:$0xff]  }
 0x270   :  { %2546 = vmatpush1.bf16.msra.mxu0 %v4742_v1  ;;  %v4814_v1 = vld [vmem:[%s5385_s8 + $0xec] ss:$16 sps:$4 sm:$0xff]  }
 0x271   :  { %2547 = vmatprep.subr.bf16.mxu0 %v4747_v2  ;;  %v4812_v2 = vld [vmem:[%s5385_s8 + $0xe8] ss:$16 sps:$4 sm:$0xff]  }
 0x274   :  { %2548 = vmatpush1.bf16.msra.mxu0 %v4745_v4  ;;  %v4816_v4 = vld [vmem:[#allocation8] sm:$0xff]  }
 0x275   :  { %2549 = vmatprep.subr.bf16.mxu0 %v4750_v5  ;;  %v4817_v5 = vld [vmem:[#allocation8 + $0x48] sm:$0xff]  }
 0x278   :  { %2550 = vmatpush1.bf16.msra.mxu0 %v4748_v43  ;;  %v4819_v43 = vld [vmem:[#allocation8 + $0x50] sm:$0xff]  }
 0x27b   :  { %2552 = vmatmul.mubr.bf16.vlgmr.msra.gmra.mrb[4].mxu0 %v2080_v8  ;;  %v4821_v8 = vld [vmem:[#allocation8 + $0x58] sm:$0xff]  }
 0x34e   :  { %v2553_v23 = vpop.f32.mrb[4].mxu0 }
 0x34f   :  { %v4227_v24 = vadd.f32 %v2553_v23, %v2151_v19  ;;  %v2555_v25 = vpop.f32.mrb[5].mxu0  ;;  %v4828_v19 = vld [vmem:[#allocation8 + $0x30] sm:$0xff]   ;;  %v4830_v23 = vld [vmem:[#allocation8 + $0x38] sm:$0xff]  }
 0x350   :  { %v4228_v26 = vadd.f32 %v2555_v25, %v2155_v20  ;;  %v2557_v27 = vpop.f32.mrb[6].mxu0  ;;  %v4829_v20 = vld [vmem:[#allocation8 + $0x78] sm:$0xff]   ;;  %v4832_v25 = vld [vmem:[#allocation8 + $0x80] sm:$0xff]  }
 0x351   :  { %vm2560_vm4 = vcmp.ge.f32.partialorder %v4227_v24, 0.0  ;;  %v2562_v28 = vmul.f32 0.2, %v4227_v24  ;;  %v2558_v29 = vpop.f32.mrb[7].mxu0  ;;  %v4834_v27 = vld [vmem:[#allocation8 + $0x88] sm:$0xff]  }
 0x352   :  { %vm2561_vm5 = vcmp.ge.f32.partialorder %v4228_v26, 0.0  ;;  %v2563_v30 = vmul.f32 0.2, %v4228_v26  ;;  %v4836_v29 = vld [vmem:[#allocation8 + $0x90] sm:$0xff]  }
 0x353   :  { %v2564_v31 = vsel %vm2560_vm4, %v4227_v24, %v2562_v28  ;;  %v4831_v24 = vld [vmem:[#allocation8 + $0xc0] sm:$0xff]   ;;  %v4835_v28 = vld [vmem:[#allocation8 + $0xd0] sm:$0xff]  }
 0x354   :  { %v2565_v32 = vsel %vm2561_vm5, %v4228_v26, %v2563_v30  ;;  %v2566_v34 = vpack.c.bf16 %v2564_v31, %v2564_v31  ;;  %4201 = vmatprep.subr.bf16.mxu0 %v4831_v24  ;;  %v4833_v26 = vld [vmem:[#allocation8 + $0xc8] sm:$0xff]   ;;  %v4837_v30 = vld [vmem:[#allocation8 + $0xd8] sm:$0xff]  }
 0x355   :  { %v2567_v16 = vpack.c.bf16 %v2565_v32, %v2565_v32  ;;  %4202 = vmatpush3.bf16.msra.mxu0 %v4832_v25  ;;  %v4838_v31 = vld [vmem:[#allocation8 + $0x98] sm:$0xff]   ;;  %v4839_v32 = vld [vmem:[#allocation8 + $0xe0] sm:$0xff]  }
 0x356   :  { %4203 = vmatprep.subr.bf16.mxu0 %v4833_v26  ;;  %v4886_v24 = vld [vmem:[#allocation10 + $0xc8] ss:$16 sps:$4 sm:$0xff]   ;;  %v4891_v25 = vld [vmem:[#allocation10 + $0xe4] ss:$16 sps:$4 sm:$0xff]   ;;  %v4894_v26 = vld [vmem:[#allocation10 + $0xec] ss:$16 sps:$4 sm:$0xff]  }
 0x357   :  { %2735 = vmatprep.mubr.bf16.mxu1 %v2567_v16  ;;  %v4840_v16 = vld [vmem:[#allocation8 + $0xa0] sm:$0xff]  }
 0x358   :  { %2736 = vmatmul.mubr.bf16.vlgmr.msra.gmra.mrb[4].mxu1 %v2566_v34  ;;  %v4842_v34 = vld [vmem:[#allocation8 + $0xa8] sm:$0xff]  }
 0x359   :  { %2940 = vmatpush1.bf16.msra.mxu1 %v4767_v33  ;;  %2971 = vmatprep.mubr.bf16.mxu1 %v5023_v37  ;;  %v4841_v33 = vld [vmem:[#allocation8 + $0xe8] sm:$0xff]  }
 0x35a   :  { %2941 = vmatprep.subr.bf16.mxu1 %v4772_v35  ;;  %4204 = vmatpush3.bf16.msra.mxu0 %v4834_v27  ;;  %v4843_v35 = vld [vmem:[#allocation8 + $0xf0] sm:$0xff]  }
 0x35b   :  { %4205 = vmatprep.subr.bf16.mxu0 %v4835_v28  ;;  %v4889_v27 = vld [vmem:[#allocation10 + $0xe0] ss:$16 sps:$4 sm:$0xff]   ;;  %v4892_v28 = vld [vmem:[#allocation10 + $0xe8] ss:$16 sps:$4 sm:$0xff]  }
 0x35d   :  { %2942 = vmatpush1.bf16.msra.mxu1 %v4770_v36  ;;  %v4844_v36 = vld [vmem:[#allocation8 + $0xb0] sm:$0xff]  }
 0x35e   :  { %2943 = vmatprep.subr.bf16.mxu1 %v4775_v22  ;;  %4206 = vmatpush3.bf16.msra.mxu0 %v4836_v29  ;;  %v4845_v22 = vld [vmem:[#allocation8 + $0xf8] sm:$0xff]  }
 0x35f   :  { %4207 = vmatprep.subr.bf16.mxu0 %v4837_v30 }
 0x361   :  { %2944 = vmatpush1.bf16.msra.mxu1 %v4773_v38  ;;  %v4846_v38 = vld [vmem:[#allocation8 + $0xb8] sm:$0xff]  }
 0x362   :  { %2945 = vmatprep.subr.bf16.mxu1 %v4778_v39  ;;  %4208 = vmatpush3.bf16.msra.mxu0 %v4838_v31 }
 0x363   :  { %4209 = vmatprep.subr.bf16.mxu0 %v4839_v32 }
 0x365   :  { %2946 = vmatpush1.bf16.msra.mxu1 %v4776_v21 }
 0x366   :  { %2947 = vmatprep.subr.bf16.mxu1 %v4781_v40  ;;  %4210 = vmatpush3.bf16.msra.mxu0 %v4840_v16 }
 0x367   :  { %4211 = vmatprep.subr.bf16.mxu0 %v4841_v33  ;;  %v4042_v33 = vld [vmem:[%s5384_s7] ss:$0 sm:$0xff] }
 0x369   :  { %2948 = vmatpush1.bf16.msra.mxu1 %v4779_v41 }
 0x36a   :  { %2949 = vmatprep.subr.bf16.mxu1 %v4784_v42  ;;  %4212 = vmatpush3.bf16.msra.mxu0 %v4842_v34  ;;  %v4091_v34 = vld [vmem:[%s5387_s10] ss:$0 sm:$0xff] }
 0x36b   :  { %4213 = vmatprep.subr.bf16.mxu0 %v4843_v35 }
 0x36d   :  { %2950 = vmatpush1.bf16.msra.mxu1 %v4782_v44 }
 0x36e   :  { %2951 = vmatprep.subr.bf16.mxu1 %v4787_v45  ;;  %4214 = vmatpush3.bf16.msra.mxu0 %v4844_v36 }
 0x36f   :  { %4215 = vmatprep.subr.bf16.mxu0 %v4845_v22 }
 0x371   :  { %2952 = vmatpush1.bf16.msra.mxu1 %v4785_v46 }
 0x372   :  { %2953 = vmatprep.subr.bf16.mxu1 %v4790_v47  ;;  %4216 = vmatpush3.bf16.msra.mxu0 %v4846_v38 }
 0x375   :  { %2954 = vmatpush1.bf16.msra.mxu1 %v4788_v48 }
 0x376   :  { %2980 = vmatprep.subr.bf16.mxu1 %v4793_v49 }
 0x378   :  { %2972 = vmatmul.mubr.bf16.vlgmr.msra.gmra.mrb[8].mxu1 %v2746_v50 }
 0x379   :  { %2981 = vmatpush1.bf16.msra.mxu1 %v4791_v51  ;;  %3012 = vmatprep.mubr.bf16.mxu1 %v5023_v37 }
 0x37a   :  { %2982 = vmatprep.subr.bf16.mxu1 %v4796_v52 }
 0x37d   :  { %2983 = vmatpush1.bf16.msra.mxu1 %v4794_v53 }
 0x37e   :  { %2984 = vmatprep.subr.bf16.mxu1 %v4799_v54 }
 0x381   :  { %2985 = vmatpush1.bf16.msra.mxu1 %v4797_v55 }
 0x382   :  { %2986 = vmatprep.subr.bf16.mxu1 %v4802_v56  ;;  %v4847_v56 = vld [vmem:[#allocation10] ss:$16 sps:$4 sm:$0xff]  }
 0x385   :  { %2987 = vmatpush1.bf16.msra.mxu1 %v4800_v57  ;;  %v4849_v57 = vld [vmem:[#allocation10 + $0x4] ss:$16 sps:$4 sm:$0xff]  }
 0x386   :  { %2988 = vmatprep.subr.bf16.mxu1 %v4805_v58  ;;  %v4850_v58 = vld [vmem:[#allocation10 + $0x8] ss:$16 sps:$4 sm:$0xff]  }
 0x389   :  { %2989 = vmatpush1.bf16.msra.mxu1 %v4803_v59  ;;  %v4852_v59 = vld [vmem:[#allocation10 + $0xc] ss:$16 sps:$4 sm:$0xff]  }
 0x38a   :  { %2990 = vmatprep.subr.bf16.mxu1 %v4808_v60  ;;  %v4855_v60 = vld [vmem:[#allocation10 + $0x24] ss:$16 sps:$4 sm:$0xff]   ;;  %3628 = vmatprep.subr.bf16.mxu0 %v4852_v59 }
 0x38d   :  { %2991 = vmatpush1.bf16.msra.mxu1 %v4806_v62  ;;  %v4858_v62 = vld [vmem:[#allocation10 + $0x2c] ss:$16 sps:$4 sm:$0xff]  }
 0x38e   :  { %2992 = vmatprep.subr.bf16.mxu1 %v4811_v63  ;;  %v4853_v63 = vld [vmem:[#allocation10 + $0x20] ss:$16 sps:$4 sm:$0xff]  }
 0x391   :  { %2993 = vmatpush1.bf16.msra.mxu1 %v4809_v0  ;;  %v4856_v0 = vld [vmem:[#allocation10 + $0x28] ss:$16 sps:$4 sm:$0xff]  }
 0x392   :  { %2994 = vmatprep.subr.bf16.mxu1 %v4814_v1  ;;  %v4861_v1 = vld [vmem:[#allocation10 + $0x44] ss:$16 sps:$4 sm:$0xff]  }
 0x395   :  { %2995 = vmatpush1.bf16.msra.mxu1 %v4812_v2  ;;  %v4864_v2 = vld [vmem:[#allocation10 + $0x4c] ss:$16 sps:$4 sm:$0xff]  }
 0x396   :  { %4179 = vmatprep.subr.bf16.mxu1 %v4815_v3  ;;  %v4859_v3 = vld [vmem:[#allocation10 + $0x40] ss:$16 sps:$4 sm:$0xff]  }
 0x398   :  { %3013 = vmatmul.mubr.bf16.vlgmr.msra.gmra.mrb[12].mxu1 %v2746_v50 }
 0x399   :  { %4180 = vmatpush3.bf16.msra.mxu1 %v4816_v4  ;;  %v4867_v4 = vld [vmem:[#allocation10 + $0x64] ss:$16 sps:$4 sm:$0xff]  }
 0x39a   :  { %4181 = vmatprep.subr.bf16.mxu1 %v4817_v5  ;;  %v4870_v5 = vld [vmem:[#allocation10 + $0x6c] ss:$16 sps:$4 sm:$0xff]  }
 0x39d   :  { %4182 = vmatpush3.bf16.msra.mxu1 %v4818_v6  ;;  %v4865_v6 = vld [vmem:[#allocation10 + $0x60] ss:$16 sps:$4 sm:$0xff]  }
 0x39e   :  { %4183 = vmatprep.subr.bf16.mxu1 %v4819_v43  ;;  %v4868_v43 = vld [vmem:[#allocation10 + $0x68] ss:$16 sps:$4 sm:$0xff]  }
 0x3a1   :  { %4184 = vmatpush3.bf16.msra.mxu1 %v4820_v7  ;;  %v4873_v7 = vld [vmem:[#allocation10 + $0x84] ss:$16 sps:$4 sm:$0xff]  }
 0x3a2   :  { %4185 = vmatprep.subr.bf16.mxu1 %v4821_v8  ;;  %v4876_v8 = vld [vmem:[#allocation10 + $0x8c] ss:$16 sps:$4 sm:$0xff]  }
 0x3a5   :  { %4186 = vmatpush3.bf16.msra.mxu1 %v4822_v10  ;;  %v4871_v10 = vld [vmem:[#allocation10 + $0x80] ss:$16 sps:$4 sm:$0xff]  }
 0x3a6   :  { %4187 = vmatprep.subr.bf16.mxu1 %v4823_v13  ;;  %v4874_v13 = vld [vmem:[#allocation10 + $0x88] ss:$16 sps:$4 sm:$0xff]  }
 0x3a9   :  { %4188 = vmatpush3.bf16.msra.mxu1 %v4824_v14  ;;  %v4879_v14 = vld [vmem:[#allocation10 + $0xa4] ss:$16 sps:$4 sm:$0xff]  }
 0x3aa   :  { %4189 = vmatprep.subr.bf16.mxu1 %v4825_v15  ;;  %v4882_v15 = vld [vmem:[#allocation10 + $0xac] ss:$16 sps:$4 sm:$0xff]  }
 0x3ad   :  { %4190 = vmatpush3.bf16.msra.mxu1 %v4826_v17  ;;  %v4877_v17 = vld [vmem:[#allocation10 + $0xa0] ss:$16 sps:$4 sm:$0xff]  }
 0x3ae   :  { %4191 = vmatprep.subr.bf16.mxu1 %v4827_v18  ;;  %v4880_v18 = vld [vmem:[#allocation10 + $0xa8] ss:$16 sps:$4 sm:$0xff]  }
 0x3b1   :  { %4192 = vmatpush3.bf16.msra.mxu1 %v4828_v19  ;;  %v4885_v19 = vld [vmem:[#allocation10 + $0xc4] ss:$16 sps:$4 sm:$0xff]  }
 0x3b2   :  { %4193 = vmatprep.subr.bf16.mxu1 %v4829_v20  ;;  %v4888_v20 = vld [vmem:[#allocation10 + $0xcc] ss:$16 sps:$4 sm:$0xff]  }
 0x3b5   :  { %4194 = vmatpush3.bf16.msra.mxu1 %v4830_v23  ;;  %v4883_v23 = vld [vmem:[#allocation10 + $0xc0] ss:$16 sps:$4 sm:$0xff]  }
 0x3b6   :  { %3587 = vmatprep.subr.bf16.mxu1 %v4849_v57 }
 0x42b   :  { %v4173_v39 = vpop.f32.mrb[4].mxu1 }
 0x42c   :  { %v4174_v21 = vpop.f32.mrb[5].mxu1 }
 0x42d   :  { %v5345_v40 = vadd.f32 %v4174_v21, %v4173_v39  ;;  %v4176_v41 = vpop.f32.mrb[6].mxu1 }
 0x42e   :  { %v4177_v42 = vpop.f32.mrb[7].mxu1 }
 0x42f   :  { %v2738_v35 = vadd.f32 %v5345_v40, %v4042_v33  ;;  %v3405_v40 = vld [vmem:[%s5389_s12] sm:$0xf] }
 0x431   :  { %v2744_v42 = vmul.f32 0.2, %v2738_v35  ;;  %vm2743_vm6 = vcmp.ge.f32.partialorder %v2738_v35, 0.0 }
 0x44b   :  { %v2973_v44 = vpop.f32.mrb[8].mxu1 }
 0x44c   :  { %v3021_v45 = vpack.c.bf16 %v2973_v44, %v2973_v44  ;;  %v2975_v46 = vpop.f32.mrb[9].mxu1 }
 0x44d   :  { %v3022_v47 = vpack.c.bf16 %v2975_v46, %v2975_v46  ;;  %v2977_v48 = vpop.f32.mrb[10].mxu1  ;;  %v2745_v46 = vsel %vm2743_vm6, %v2738_v35, %v2744_v42 }
 0x44e   :  { %v2978_v49 = vpop.f32.mrb[11].mxu1 }
 0x44f   :  { %3320 = vmatprep.mubr.bf16.mxu1 %v3022_v47 }
 0x450   :  { %3321 = vmatmul.mubr.bf16.vlgmr.msra.gmra.mrb[16].mxu1 %v3021_v45 }
 0x451   :  { %3619 = vmatprep.mubr.bf16.mxu1 %v5023_v37  ;;  %3588 = vmatpush1.bf16.msra.mxu1 %v4847_v56 }
 0x452   :  { %3589 = vmatprep.subr.bf16.mxu1 %v4855_v60 }
 0x455   :  { %3590 = vmatpush1.bf16.msra.mxu1 %v4853_v63 }
 0x456   :  { %3591 = vmatprep.subr.bf16.mxu1 %v4861_v1 }
 0x459   :  { %3592 = vmatpush1.bf16.msra.mxu1 %v4859_v3 }
 0x45a   :  { %3593 = vmatprep.subr.bf16.mxu1 %v4867_v4 }
 0x45d   :  { %3594 = vmatpush1.bf16.msra.mxu1 %v4865_v6 }
 0x45e   :  { %3595 = vmatprep.subr.bf16.mxu1 %v4873_v7 }
 0x461   :  { %3596 = vmatpush1.bf16.msra.mxu1 %v4871_v10 }
 0x462   :  { %3597 = vmatprep.subr.bf16.mxu1 %v4879_v14 }
 0x465   :  { %3598 = vmatpush1.bf16.msra.mxu1 %v4877_v17 }
 0x466   :  { %3599 = vmatprep.subr.bf16.mxu1 %v4885_v19 }
 0x469   :  { %3600 = vmatpush1.bf16.msra.mxu1 %v4883_v23 }
 0x46a   :  { %3601 = vmatprep.subr.bf16.mxu1 %v4891_v25 }
 0x46b   :  { %v3014_v50 = vpop.f32.mrb[12].mxu1 }
 0x46c   :  { %v3016_v51 = vpop.f32.mrb[13].mxu1  ;;  %v3023_v54 = vpack.c.bf16 %v3014_v50, %v3014_v50  ;;  %v3669_v50 = vld [vmem:[%s5390_s13] sm:$0xf] }
 0x46d   :  { %v3024_v52 = vpack.c.bf16 %v3016_v51, %v3016_v51  ;;  %v3018_v53 = vpop.f32.mrb[14].mxu1  ;;  %3602 = vmatpush1.bf16.msra.mxu1 %v4889_v27  ;;  %v3410_v51 = vrot.slane %v3405_v40, %v5212_v9  ;;  %v3678_v59 = vrot.slane %v3669_v50, %v5220_v11  ;;  %v3686_v3 = vrot.slane %v3669_v50, %v5223_v12 }
 0x46e   :  { %v3019_v55 = vpop.f32.mrb[15].mxu1  ;;  %v3414_v53 = vrot.slane %v3405_v40, %v5220_v11 }
 0x46f   :  { %3360 = vmatprep.mubr.bf16.mxu0 %v3024_v52  ;;  %v3418_v52 = vrot.slane %v3405_v40, %v5234_v61  ;;  %v3674_v55 = vrot.slane %v3669_v50, %v5212_v9 }
 0x470   :  { %3361 = vmatmul.mubr.bf16.vlgmr.msra.gmra.mrb[8].mxu0 %v3023_v54  ;;  %v3422_v54 = vrot.slane %v3405_v40, %v5223_v12  ;;  %v4156_v12 = vld [vmem:[#allocation2] ss:$0 sm:$0xff] }
 0x471   :  { %3660 = vmatprep.mubr.bf16.mxu0 %v5023_v37  ;;  %3629 = vmatpush1.bf16.msra.mxu0 %v4850_v58  ;;  %v4862_v37 = vld [vmem:[#allocation10 + $0x48] ss:$16 sps:$4 sm:$0xff]   ;;  %v3682_v58 = vrot.slane %v3669_v50, %v5234_v61 }
 0x472   :  { %3630 = vmatprep.subr.bf16.mxu0 %v4858_v62 }
 0x475   :  { %3631 = vmatpush1.bf16.msra.mxu0 %v4856_v0 }
 0x476   :  { %3632 = vmatprep.subr.bf16.mxu0 %v4864_v2 }
 0x479   :  { %3633 = vmatpush1.bf16.msra.mxu0 %v4862_v37 }
 0x47a   :  { %3634 = vmatprep.subr.bf16.mxu0 %v4870_v5 }
 0x47d   :  { %3635 = vmatpush1.bf16.msra.mxu0 %v4868_v43 }
 0x47e   :  { %3636 = vmatprep.subr.bf16.mxu0 %v4876_v8 }
 0x481   :  { %3637 = vmatpush1.bf16.msra.mxu0 %v4874_v13 }
 0x482   :  { %3638 = vmatprep.subr.bf16.mxu0 %v4882_v15 }
 0x485   :  { %3639 = vmatpush1.bf16.msra.mxu0 %v4880_v18 }
 0x486   :  { %3640 = vmatprep.subr.bf16.mxu0 %v4888_v20 }
 0x489   :  { %3641 = vmatpush1.bf16.msra.mxu0 %v4886_v24 }
 0x48a   :  { %3642 = vmatprep.subr.bf16.mxu0 %v4894_v26 }
 0x48d   :  { %3643 = vmatpush1.bf16.msra.mxu0 %v4892_v28 }
 0x523   :  { %v4195_v29 = vpop.f32.mrb[16].mxu1 }
 0x524   :  { %v4196_v30 = vpop.f32.mrb[17].mxu1 }
 0x525   :  { %v4197_v31 = vadd.f32 %v4196_v30, %v4195_v29  ;;  %v4198_v32 = vpop.f32.mrb[18].mxu1 }
 0x526   :  { %v4199_v16 = vpop.f32.mrb[19].mxu1 }
 0x527   :  { %v3323_v38 = vadd.f32 %v4197_v31, %v4091_v34 }
 0x543   :  { %v4217_v36 = vpop.f32.mrb[8].mxu0 }
 0x544   :  { %v4218_v22 = vpop.f32.mrb[9].mxu0 }
 0x545   :  { %v4219_v39 = vadd.f32 %v4218_v22, %v4217_v36  ;;  %v4220_v21 = vpop.f32.mrb[10].mxu0 }
 0x546   :  { %v4221_v41 = vpop.f32.mrb[11].mxu0 }
 0x547   :  { %v3363_v44 = vadd.f32 %v4219_v39, %v3323_v38 }
 0x549   :  { %vm3368_vm7 = vcmp.ge.f32.partialorder %v3363_v44, 0.0  ;;  %v3369_v45 = vmul.f32 0.2, %v3363_v44 }
 0x54b   :  { %v3370_v47 = vsel %vm3368_vm7, %v3363_v44, %v3369_v45 }
 0x54c   :  { %v3371_v48 = vmul.f32 %v3370_v47, %v2745_v46 }
 0x54e   :  { %v3372_v49 = vpack.c.bf16 %v3371_v48, %v3371_v48 }
 0x550   :  { %3620 = vmatmul.mubr.bf16.vlgmr.msra.gmra.mrb[20].mxu1 %v3372_v49  ;;  %3661 = vmatmul.mubr.bf16.vlgmr.msra.gmra.mrb[12].mxu0 %v3372_v49 }
 0x623   :  { %v3621_v56 = vpop.f32.mrb[20].mxu1  ;;  %v3662_v57 = vpop.f32.mrb[12].mxu0 }
 0x624   :  { %v3622_v60 = vadd.f32 %v3621_v56, %v3410_v51  ;;  %v3663_v62 = vadd.f32 %v3662_v57, %v3418_v52  ;;  %v3623_v63 = vpop.f32.mrb[21].mxu1  ;;  %v3664_v0 = vpop.f32.mrb[13].mxu0 }
 0x625   :  { %v3624_v1 = vadd.f32 %v3623_v63, %v3414_v53  ;;  %v3665_v2 = vadd.f32 %v3664_v0, %v3422_v54  ;;  %v3625_v37 = vpop.f32.mrb[22].mxu1  ;;  %v3666_v4 = vpop.f32.mrb[14].mxu0 }
 0x626   :  { %v3691_v5 = vmul.f32 %v3674_v55, %v3622_v60  ;;  %v3626_v6 = vpop.f32.mrb[23].mxu1  ;;  %v3667_v9 = vpop.f32.mrb[15].mxu0  ;;  %v3693_v43 = vmul.f32 %v3682_v58, %v3663_v62 }
 0x627   :  { %v3692_v7 = vmul.f32 %v3678_v59, %v3624_v1  ;;  %v3694_v8 = vmul.f32 %v3686_v3, %v3665_v2 }
 0x628   :  { %v3696_v61 = vsel %vm3695_vm8, %v3691_v5, 0.0  ;;  %v3699_v13 = vsel %vm3695_vm8, %v3693_v43, 0.0 }
 0x629   :  { %v3697_v11 = vsel %vm3695_vm8, %v3692_v7, 0.0  ;;  %v3701_v15 = vsel %vm3695_vm8, %v3694_v8, 0.0 }
 0x62a   :  { %v3698_v10 = vadd.f32 %v3697_v11, %v3696_v61 }
 0x62c   :  { %v3700_v14 = vadd.f32 %v3699_v13, %v3698_v10 }
 0x62e   :  { %v3702_v17 = vadd.f32 %v3701_v15, %v3700_v14 }
 0x630   :  { %3703 = vadd.xlane.f32.xlu0 %v3702_v17 }
 0x6bd   :  { %v3704_v18 = vpop.xlane.xlu0 %3703 }
 0x6be   :  { %v3712_v19 = vadd.f32 %v4156_v12, %v3704_v18 }
 0x6c0   :  { %3714 = vst.msk [vmem:[%s5392_s15] sm:$0x3] %vm3713_vm9, %v3712_v19 }
 0x6c1   :  { %3719 = vsyncpa [#allocation4], 1 }
 0x6c2   :  { %3720 = vsyncpa [#allocation6], 1 }
 0x6c3   :  { %3721 = vsyncpa [#allocation9], 1 }

</bundles_post_ra>
